<compile_context>
chip_gen: v5e
topology: v5e:2x2
jax: 0.10.0
libtpu: 0.0.40
codegen_flags: <defaults>
</compile_context>

<pallas_src>
import jax
import jax.numpy as jnp
from jax.experimental import pallas as pl
from jax.experimental.pallas import tpu as pltpu

EPS = 1e-5
TM_CAP = 4096  # max lane tile (multiple of 128); capped for VMEM headroom


def _round_up(x, m):
    return (x + m - 1) // m * m


def _choose_tm(m):
    """Lane tile: big enough to amortize per-step overhead, no waste if M small."""
    return min(TM_CAP, _round_up(m, 128))


# ---------------------------------------------------------------------------
# Pallas kernels
# ---------------------------------------------------------------------------
def conv_stats_kernel(b_ref, a_ref, y_ref, stats_ref):
    """Lane-dense conv tile (Cout, TM) + per-tile BN partial sums (1, Cout, 2)."""
    y = jnp.dot(b_ref[...], a_ref[...], preferred_element_type=jnp.float32)
    y_ref[...] = y
    s1 = jnp.sum(y, axis=1, keepdims=True)        # (Cout, 1)
    s2 = jnp.sum(y * y, axis=1, keepdims=True)    # (Cout, 1)
    stats_ref[...] = jnp.concatenate([s1, s2], axis=1)[None]   # (1, Cout, 2)


def conv_tanh_kernel(b_ref, a_ref, y_ref):
    """Final conv (conv4) fused with tanh, lane-dense (Cout, TM) output."""
    y = jnp.dot(b_ref[...], a_ref[...], preferred_element_type=jnp.float32)
    y_ref[...] = jnp.tanh(y)


def bn_relu_kernel(y_ref, scale_ref, shift_ref, o_ref):
    """Lane-dense BN-apply + ReLU; scale/shift are (C, 1) sublane broadcasts.

    Compute in f32, store bf16 (the next conv's MXU operand)."""
    o_ref[...] = jnp.maximum(
        y_ref[...] * scale_ref[...] + shift_ref[...], 0.0).astype(o_ref.dtype)


# ---------------------------------------------------------------------------
# Wrappers (im2col glue, padding, pallas_call plumbing, stats finalization)
# ---------------------------------------------------------------------------
def im2col(x, k):
    """(C, N, D, H, W) -> (C*k^3, N*D*H*W) with 'same' zero padding.

    Row order (c, kd, kh, kw) matches PyTorch weight.reshape(Cout, -1);
    column order is (n, d, h, w)."""
    c, n, d, h, w = x.shape
    p = k // 2
    xp = jnp.pad(x, ((0, 0), (0, 0), (p, p), (p, p), (p, p)))
    slabs = [xp[:, :, kd:kd + d, kh:kh + h, kw:kw + w]
             for kd in range(k) for kh in range(k) for kw in range(k)]
    a = jnp.stack(slabs, axis=1)                  # (C, k^3, N, D, H, W)
    return a.reshape(c * k * k * k, n * d * h * w)


def _pad_operands(a, b, tm):
    """Pad A (K, M) and B (Cout, K): K -> multiple of 8, M -> multiple of tm."""
    kdim, m = a.shape
    kpad = _round_up(kdim, 8)
    mpad = _round_up(m, tm)
    a = jnp.pad(a, ((0, kpad - kdim), (0, mpad - m)))
    b = jnp.pad(b, ((0, 0), (0, kpad - kdim)))
    return a, b, kpad, mpad


def conv_bn_stats(a, b, tm):
    """a: (K, M) bf16 im2col matrix, b: (Cout, K) bf16 weights.

    Returns ((Cout, Mpad) f32 conv output, (Cout, 2) f32 [sum, sumsq])."""
    cout = b.shape[0]
    a, b, kpad, mpad = _pad_operands(a, b, tm)
    nt = mpad // tm
    y, partial = pl.pallas_call(
        conv_stats_kernel,
        out_shape=(jax.ShapeDtypeStruct((cout, mpad), jnp.float32),
                   jax.ShapeDtypeStruct((nt, cout, 2), jnp.float32)),
        grid_spec=pltpu.PrefetchScalarGridSpec(
            num_scalar_prefetch=0, grid=(nt,),
            in_specs=[pl.BlockSpec((cout, kpad), lambda i: (0, 0)),
                      pl.BlockSpec((kpad, tm), lambda i: (0, i))],
            out_specs=(pl.BlockSpec((cout, tm), lambda i: (0, i)),
                       pl.BlockSpec((1, cout, 2), lambda i: (i, 0, 0)))),
        compiler_params=pltpu.CompilerParams(
            dimension_semantics=("parallel",)),
    )(b, a)
    # Padded A columns are zero -> they contribute 0 to sum/sumsq.
    return y, jnp.sum(partial, axis=0)


def conv_tanh(a, b, tm):
    """Final conv + tanh; returns (Cout, Mpad) f32."""
    cout = b.shape[0]
    a, b, kpad, mpad = _pad_operands(a, b, tm)
    nt = mpad // tm
    return pl.pallas_call(
        conv_tanh_kernel,
        out_shape=jax.ShapeDtypeStruct((cout, mpad), jnp.float32),
        grid_spec=pltpu.PrefetchScalarGridSpec(
            num_scalar_prefetch=0, grid=(nt,),
            in_specs=[pl.BlockSpec((cout, kpad), lambda i: (0, 0)),
                      pl.BlockSpec((kpad, tm), lambda i: (0, i))],
            out_specs=pl.BlockSpec((cout, tm), lambda i: (0, i))),
        compiler_params=pltpu.CompilerParams(
            dimension_semantics=("parallel",)),
    )(b, a)


def bn_relu(y, stats, count, gamma, beta, tm):
    """y: (C, Mpad) f32 conv output; stats: (C, 2) [sum, sumsq] over M.

    Training-mode BN (biased variance) + ReLU, lane-dense, bf16 output."""
    mean = stats[:, 0] / count
    var = stats[:, 1] / count - mean * mean   # biased var; fine at f32 scale here
    scale = gamma / jnp.sqrt(var + EPS)
    shift = beta - mean * scale
    c, mpad = y.shape
    nt = mpad // tm
    return pl.pallas_call(
        bn_relu_kernel,
        out_shape=jax.ShapeDtypeStruct((c, mpad), jnp.bfloat16),
        grid_spec=pltpu.PrefetchScalarGridSpec(
            num_scalar_prefetch=0, grid=(nt,),
            in_specs=[pl.BlockSpec((c, tm), lambda i: (0, i)),
                      pl.BlockSpec((c, 1), lambda i: (0, 0)),
                      pl.BlockSpec((c, 1), lambda i: (0, 0))],
            out_specs=pl.BlockSpec((c, tm), lambda i: (0, i))),
        compiler_params=pltpu.CompilerParams(
            dimension_semantics=("parallel",)),
    )(y, scale.reshape(c, 1), shift.reshape(c, 1))


# ---------------------------------------------------------------------------
# Model: parameters + forward
# ---------------------------------------------------------------------------
def init_params(num, key):
    ks = jax.random.split(key, 4)

    def w(k, cout, cin, ksz):
        fan_in = cin * ksz ** 3
        std = (2.0 / fan_in) ** 0.5
        return std * jax.random.normal(k, (cout, cin, ksz, ksz, ksz), jnp.float32)

    return {
        "conv1": w(ks[0], 2 * num, 1, 5),
        "conv2": w(ks[1], num, 2 * num, 3),
        "conv3": w(ks[2], num // 2, num, 3),
        "conv4": w(ks[3], 1, num // 2, 3),
        "bn1_gamma": jnp.ones((2 * num,), jnp.float32),
        "bn1_beta": jnp.zeros((2 * num,), jnp.float32),
        "bn2_gamma": jnp.ones((num,), jnp.float32),
        "bn2_beta": jnp.zeros((num,), jnp.float32),
        "bn3_gamma": jnp.ones((num // 2,), jnp.float32),
        "bn3_beta": jnp.zeros((num // 2,), jnp.float32),
    }


def netG_forward(params, x):
    n, _, d, h, w = x.shape
    m = n * d * h * w
    tm = _choose_tm(m)

    # (N, 1, D, H, W) -> channels-first (1, N, D, H, W); size-1-axis move only.
    act = jnp.transpose(x, (1, 0, 2, 3, 4)).astype(jnp.bfloat16)

    def layer(act_c, wname, gname, bname, ksz):
        cout = params[wname].shape[0]
        a = im2col(act_c, ksz)                                     # (K, M) bf16
        bmat = params[wname].reshape(cout, -1).astype(jnp.bfloat16)
        y, stats = conv_bn_stats(a, bmat, tm)
        yb = bn_relu(y, stats, float(m), params[gname], params[bname], tm)
        return yb[:, :m].reshape(cout, n, d, h, w)

    act = layer(act, "conv1", "bn1_gamma", "bn1_beta", 5)
    act = layer(act, "conv2", "bn2_gamma", "bn2_beta", 3)
    act = layer(act, "conv3", "bn3_gamma", "bn3_beta", 3)

    # conv4 + tanh
    a = im2col(act, 3)
    bmat = params["conv4"].reshape(1, -1).astype(jnp.bfloat16)
    y = conv_tanh(a, bmat, tm)                                     # (1, Mpad) f32
    y = y[:, :m].reshape(1, n, d, h, w)
    return jnp.transpose(y, (1, 0, 2, 3, 4))                       # (N, 1, D, H, W)


# ---------------------------------------------------------------------------
# References (for correctness check)
# ---------------------------------------------------------------------------
def ref_forward(params, x, operand_dtype=None):
    """operand_dtype=None: strict f32 (PyTorch semantics).
       operand_dtype=bf16: matches the kernel's MXU operand precision."""

    def conv(xa, wt):
        p = wt.shape[2] // 2
        if operand_dtype is not None:
            xa = xa.astype(operand_dtype)
            wt = wt.astype(operand_dtype)
        return jax.lax.conv_general_dilated(
            xa, wt, window_strides=(1, 1, 1), padding=[(p, p)] * 3,
            dimension_numbers=("NCDHW", "OIDHW", "NCDHW"),
            preferred_element_type=jnp.float32)

    def bn_relu_ref(y, g, b):
        mean = jnp.mean(y, axis=(0, 2, 3, 4), keepdims=True)
        var = jnp.mean((y - mean) ** 2, axis=(0, 2, 3, 4), keepdims=True)
        yn = (y - mean) / jnp.sqrt(var + EPS)
        yn = yn * g.reshape(1, -1, 1, 1, 1) + b.reshape(1, -1, 1, 1, 1)
        return jnp.maximum(yn, 0.0)

    y = bn_relu_ref(conv(x, params["conv1"]), params["bn1_gamma"], params["bn1_beta"])
    y = bn_relu_ref(conv(y, params["conv2"]), params["bn2_gamma"], params["bn2_beta"])
    y = bn_relu_ref(conv(y, params["conv3"]), params["bn3_gamma"], params["bn3_beta"])
    return jnp.tanh(conv(y, params["conv4"]))


if __name__ == "__main__":
    num = 4                              # channels: 1 -> 8 -> 4 -> 2 -> 1
    key = jax.random.PRNGKey(0)
    kp, kx = jax.random.split(key)
    params = init_params(num, kp)
    x = jax.random.normal(kx, (2, 1, 8, 8, 8), jnp.float32)   # NCDHW

    out = jax.block_until_ready(jax.jit(netG_forward)(params, x))
    assert out.shape == (2, 1, 8, 8, 8)

    # Tight check against a reference using the same bf16 MXU operand precision.
    ref_bf = jax.block_until_ready(ref_forward(params, x, jnp.bfloat16))
    err_bf = float(jnp.max(jnp.abs(out - ref_bf)))
    assert jnp.allclose(out, ref_bf, atol=1e-2, rtol=1e-2), err_bf

    # Coarse sanity check against strict f32 semantics (bf16 operand rounding
    # accumulates across 4 conv + 3 training-mode-BN layers).
    ref_f32 = jax.block_until_ready(ref_forward(params, x, None))
    err_f32 = float(jnp.max(jnp.abs(out - ref_f32)))
    assert jnp.allclose(out, ref_f32, atol=1e-1, rtol=1e-1), err_f32

    print("KERNEL_OK")
</pallas_src>

<mosaic_0001>
module attributes {stable_mosaic.version = 11 : i64} {
  func.func @bn_relu_kernel(%arg0: i32, %arg1: memref<8x1024xf32, #tpu.memory_space<vmem>>, %arg2: memref<8x1xf32, #tpu.memory_space<vmem>>, %arg3: memref<8x1xf32, #tpu.memory_space<vmem>>, %arg4: memref<8x1024xbf16, #tpu.memory_space<vmem>>) attributes {dimension_semantics = [#tpu.dimension_semantics<parallel>], iteration_bounds = array<i64: 1>, scalar_prefetch = 0 : i64, scratch_operands = 0 : i64, tpu.core_type = #tpu.core_type<tc>, window_params = [{transform_indices = @transform_0, window_bounds = array<i64: 8, 1024>}, {pipeline_mode = #tpu.pipeline_mode<synchronous>, transform_indices = @transform_1, window_bounds = array<i64: 8, 1>}, {pipeline_mode = #tpu.pipeline_mode<synchronous>, transform_indices = @transform_2, window_bounds = array<i64: 8, 1>}, {transform_indices = @transform_3, window_bounds = array<i64: 8, 1024>}]} {
    %c0 = arith.constant 0 : index
    %c0_0 = arith.constant 0 : index
    %0 = vector.load %arg1[%c0, %c0_0] : memref<8x1024xf32, #tpu.memory_space<vmem>>, vector<8x1024xf32>
    %c0_1 = arith.constant 0 : index
    %c0_2 = arith.constant 0 : index
    %1 = vector.load %arg2[%c0_1, %c0_2] : memref<8x1xf32, #tpu.memory_space<vmem>>, vector<8x1xf32>
    %2 = vector.broadcast %1 : vector<8x1xf32> to vector<8x1024xf32>
    %3 = arith.mulf %0, %2 : vector<8x1024xf32>
    %c0_3 = arith.constant 0 : index
    %c0_4 = arith.constant 0 : index
    %4 = vector.load %arg3[%c0_3, %c0_4] : memref<8x1xf32, #tpu.memory_space<vmem>>, vector<8x1xf32>
    %5 = vector.broadcast %4 : vector<8x1xf32> to vector<8x1024xf32>
    %6 = arith.addf %3, %5 : vector<8x1024xf32>
    %cst = arith.constant 0.000000e+00 : f32
    %7 = vector.broadcast %cst : f32 to vector<8x1024xf32>
    %8 = arith.maximumf %6, %7 : vector<8x1024xf32>
    %9 = arith.truncf %8 : vector<8x1024xf32> to vector<8x1024xbf16>
    %c0_5 = arith.constant 0 : index
    %c0_6 = arith.constant 0 : index
    %10 = vector.load %arg4[%c0_5, %c0_6] : memref<8x1024xbf16, #tpu.memory_space<vmem>>, vector<8x1024xbf16>
    tpu.vector_store %arg4[%c0_5, %c0_6], %9 {strides = array<i32>} : memref<8x1024xbf16, #tpu.memory_space<vmem>>, vector<8x1024xbf16>,
    return
  }
  func.func @transform_0(%arg0: i32) -> (i32, i32) {
    %c0_i32 = arith.constant 0 : i32
    %c0_i32_0 = arith.constant 0 : i32
    return %c0_i32, %arg0 : i32, i32
  }
  func.func @transform_1(%arg0: i32) -> (i32, i32) {
    %c0_i32 = arith.constant 0 : i32
    %c0_i32_0 = arith.constant 0 : i32
    %c0_i32_1 = arith.constant 0 : i32
    return %c0_i32, %c0_i32_0 : i32, i32
  }
  func.func @transform_2(%arg0: i32) -> (i32, i32) {
    %c0_i32 = arith.constant 0 : i32
    %c0_i32_0 = arith.constant 0 : i32
    %c0_i32_1 = arith.constant 0 : i32
    return %c0_i32, %c0_i32_0 : i32, i32
  }
  func.func @transform_3(%arg0: i32) -> (i32, i32) {
    %c0_i32 = arith.constant 0 : i32
    %c0_i32_0 = arith.constant 0 : i32
    return %c0_i32, %arg0 : i32, i32
  }
}

module attributes {stable_mosaic.version = 11 : i64} {
  func.func @conv_stats_kernel(%arg0: i32, %arg1: memref<8x128xbf16, #tpu.memory_space<vmem>>, %arg2: memref<128x1024xbf16, #tpu.memory_space<vmem>>, %arg3: memref<8x1024xf32, #tpu.memory_space<vmem>>, %arg4: memref<1x8x2xf32, #tpu.memory_space<vmem>>) attributes {dimension_semantics = [#tpu.dimension_semantics<parallel>], iteration_bounds = array<i64: 1>, scalar_prefetch = 0 : i64, scratch_operands = 0 : i64, tpu.core_type = #tpu.core_type<tc>, window_params = [{pipeline_mode = #tpu.pipeline_mode<synchronous>, transform_indices = @transform_0, window_bounds = array<i64: 8, 128>}, {transform_indices = @transform_1, window_bounds = array<i64: 128, 1024>}, {transform_indices = @transform_2, window_bounds = array<i64: 8, 1024>}, {transform_indices = @transform_3, window_bounds = array<i64: 1, 8, 2>}]} {
    %c0 = arith.constant 0 : index
    %c0_0 = arith.constant 0 : index
    %0 = vector.load %arg1[%c0, %c0_0] : memref<8x128xbf16, #tpu.memory_space<vmem>>, vector<8x128xbf16>
    %c0_1 = arith.constant 0 : index
    %c0_2 = arith.constant 0 : index
    %1 = vector.load %arg2[%c0_1, %c0_2] : memref<128x1024xbf16, #tpu.memory_space<vmem>>, vector<128x1024xbf16>
    %cst = arith.constant dense<0.000000e+00> : vector<8x1024xf32>
    %2 = tpu.matmul %0, %1, %cst {dimension_numbers = #tpu.dot_dimension_numbers<[1], [0], [0], [1], [0, 0, 1, 1], [], []>} : vector<8x128xbf16>, vector<128x1024xbf16>, vector<8x1024xf32> -> vector<8x1024xf32>
    %c0_3 = arith.constant 0 : index
    %c0_4 = arith.constant 0 : index
    %3 = vector.load %arg3[%c0_3, %c0_4] : memref<8x1024xf32, #tpu.memory_space<vmem>>, vector<8x1024xf32>
    tpu.vector_store %arg3[%c0_3, %c0_4], %2 {strides = array<i32>} : memref<8x1024xf32, #tpu.memory_space<vmem>>, vector<8x1024xf32>,
    %cst_5 = arith.constant dense<0.000000e+00> : vector<8xf32>
    %4 = vector.multi_reduction <add>, %2, %cst_5 [1] : vector<8x1024xf32> to vector<8xf32>
    %5 = vector.shape_cast %4 : vector<8xf32> to vector<8x1xf32>
    %6 = arith.mulf %2, %2 : vector<8x1024xf32>
    %cst_6 = arith.constant dense<0.000000e+00> : vector<8xf32>
    %7 = vector.multi_reduction <add>, %6, %cst_6 [1] : vector<8x1024xf32> to vector<8xf32>
    %8 = vector.shape_cast %7 : vector<8xf32> to vector<8x1xf32>
    %9 = tpu.concatenate %5, %8 in 1 : vector<8x1xf32>, vector<8x1xf32> -> vector<8x2xf32>
    %10 = vector.shape_cast %9 : vector<8x2xf32> to vector<1x8x2xf32>
    %c0_7 = arith.constant 0 : index
    %c0_8 = arith.constant 0 : index
    %c0_9 = arith.constant 0 : index
    %11 = vector.load %arg4[%c0_7, %c0_8, %c0_9] : memref<1x8x2xf32, #tpu.memory_space<vmem>>, vector<1x8x2xf32>
    tpu.vector_store %arg4[%c0_7, %c0_8, %c0_9], %10 {strides = array<i32>} : memref<1x8x2xf32, #tpu.memory_space<vmem>>, vector<1x8x2xf32>,
    return
  }
  func.func @transform_0(%arg0: i32) -> (i32, i32) {
    %c0_i32 = arith.constant 0 : i32
    %c0_i32_0 = arith.constant 0 : i32
    %c0_i32_1 = arith.constant 0 : i32
    return %c0_i32, %c0_i32_0 : i32, i32
  }
  func.func @transform_1(%arg0: i32) -> (i32, i32) {
    %c0_i32 = arith.constant 0 : i32
    %c0_i32_0 = arith.constant 0 : i32
    return %c0_i32, %arg0 : i32, i32
  }
  func.func @transform_2(%arg0: i32) -> (i32, i32) {
    %c0_i32 = arith.constant 0 : i32
    %c0_i32_0 = arith.constant 0 : i32
    return %c0_i32, %arg0 : i32, i32
  }
  func.func @transform_3(%arg0: i32) -> (i32, i32, i32) {
    %c0_i32 = arith.constant 0 : i32
    %c0_i32_0 = arith.constant 0 : i32
    %c0_i32_1 = arith.constant 0 : i32
    return %arg0, %c0_i32, %c0_i32_0 : i32, i32, i32
  }
}

module attributes {stable_mosaic.version = 11 : i64} {
  func.func @conv_stats_kernel(%arg0: i32, %arg1: memref<4x216xbf16, #tpu.memory_space<vmem>>, %arg2: memref<216x1024xbf16, #tpu.memory_space<vmem>>, %arg3: memref<4x1024xf32, #tpu.memory_space<vmem>>, %arg4: memref<1x4x2xf32, #tpu.memory_space<vmem>>) attributes {dimension_semantics = [#tpu.dimension_semantics<parallel>], iteration_bounds = array<i64: 1>, scalar_prefetch = 0 : i64, scratch_operands = 0 : i64, tpu.core_type = #tpu.core_type<tc>, window_params = [{pipeline_mode = #tpu.pipeline_mode<synchronous>, transform_indices = @transform_0, window_bounds = array<i64: 4, 216>}, {transform_indices = @transform_1, window_bounds = array<i64: 216, 1024>}, {transform_indices = @transform_2, window_bounds = array<i64: 4, 1024>}, {transform_indices = @transform_3, window_bounds = array<i64: 1, 4, 2>}]} {
    %c0 = arith.constant 0 : index
    %c0_0 = arith.constant 0 : index
    %0 = vector.load %arg1[%c0, %c0_0] : memref<4x216xbf16, #tpu.memory_space<vmem>>, vector<4x216xbf16>
    %c0_1 = arith.constant 0 : index
    %c0_2 = arith.constant 0 : index
    %1 = vector.load %arg2[%c0_1, %c0_2] : memref<216x1024xbf16, #tpu.memory_space<vmem>>, vector<216x1024xbf16>
    %cst = arith.constant dense<0.000000e+00> : vector<4x1024xf32>
    %2 = tpu.matmul %0, %1, %cst {dimension_numbers = #tpu.dot_dimension_numbers<[1], [0], [0], [1], [0, 0, 1, 1], [], []>} : vector<4x216xbf16>, vector<216x1024xbf16>, vector<4x1024xf32> -> vector<4x1024xf32>
    %c0_3 = arith.constant 0 : index
    %c0_4 = arith.constant 0 : index
    %3 = vector.load %arg3[%c0_3, %c0_4] : memref<4x1024xf32, #tpu.memory_space<vmem>>, vector<4x1024xf32>
    tpu.vector_store %arg3[%c0_3, %c0_4], %2 {strides = array<i32>} : memref<4x1024xf32, #tpu.memory_space<vmem>>, vector<4x1024xf32>,
    %cst_5 = arith.constant dense<0.000000e+00> : vector<4xf32>
    %4 = vector.multi_reduction <add>, %2, %cst_5 [1] : vector<4x1024xf32> to vector<4xf32>
    %5 = vector.shape_cast %4 : vector<4xf32> to vector<4x1xf32>
    %6 = arith.mulf %2, %2 : vector<4x1024xf32>
    %cst_6 = arith.constant dense<0.000000e+00> : vector<4xf32>
    %7 = vector.multi_reduction <add>, %6, %cst_6 [1] : vector<4x1024xf32> to vector<4xf32>
    %8 = vector.shape_cast %7 : vector<4xf32> to vector<4x1xf32>
    %9 = tpu.concatenate %5, %8 in 1 : vector<4x1xf32>, vector<4x1xf32> -> vector<4x2xf32>
    %10 = vector.shape_cast %9 : vector<4x2xf32> to vector<1x4x2xf32>
    %c0_7 = arith.constant 0 : index
    %c0_8 = arith.constant 0 : index
    %c0_9 = arith.constant 0 : index
    %11 = vector.load %arg4[%c0_7, %c0_8, %c0_9] : memref<1x4x2xf32, #tpu.memory_space<vmem>>, vector<1x4x2xf32>
    tpu.vector_store %arg4[%c0_7, %c0_8, %c0_9], %10 {strides = array<i32>} : memref<1x4x2xf32, #tpu.memory_space<vmem>>, vector<1x4x2xf32>,
    return
  }
  func.func @transform_0(%arg0: i32) -> (i32, i32) {
    %c0_i32 = arith.constant 0 : i32
    %c0_i32_0 = arith.constant 0 : i32
    %c0_i32_1 = arith.constant 0 : i32
    return %c0_i32, %c0_i32_0 : i32, i32
  }
  func.func @transform_1(%arg0: i32) -> (i32, i32) {
    %c0_i32 = arith.constant 0 : i32
    %c0_i32_0 = arith.constant 0 : i32
    return %c0_i32, %arg0 : i32, i32
  }
  func.func @transform_2(%arg0: i32) -> (i32, i32) {
    %c0_i32 = arith.constant 0 : i32
    %c0_i32_0 = arith.constant 0 : i32
    return %c0_i32, %arg0 : i32, i32
  }
  func.func @transform_3(%arg0: i32) -> (i32, i32, i32) {
    %c0_i32 = arith.constant 0 : i32
    %c0_i32_0 = arith.constant 0 : i32
    %c0_i32_1 = arith.constant 0 : i32
    return %arg0, %c0_i32, %c0_i32_0 : i32, i32, i32
  }
}

module attributes {stable_mosaic.version = 11 : i64} {
  func.func @bn_relu_kernel(%arg0: i32, %arg1: memref<4x1024xf32, #tpu.memory_space<vmem>>, %arg2: memref<4x1xf32, #tpu.memory_space<vmem>>, %arg3: memref<4x1xf32, #tpu.memory_space<vmem>>, %arg4: memref<4x1024xbf16, #tpu.memory_space<vmem>>) attributes {dimension_semantics = [#tpu.dimension_semantics<parallel>], iteration_bounds = array<i64: 1>, scalar_prefetch = 0 : i64, scratch_operands = 0 : i64, tpu.core_type = #tpu.core_type<tc>, window_params = [{transform_indices = @transform_0, window_bounds = array<i64: 4, 1024>}, {pipeline_mode = #tpu.pipeline_mode<synchronous>, transform_indices = @transform_1, window_bounds = array<i64: 4, 1>}, {pipeline_mode = #tpu.pipeline_mode<synchronous>, transform_indices = @transform_2, window_bounds = array<i64: 4, 1>}, {transform_indices = @transform_3, window_bounds = array<i64: 4, 1024>}]} {
    %c0 = arith.constant 0 : index
    %c0_0 = arith.constant 0 : index
    %0 = vector.load %arg1[%c0, %c0_0] : memref<4x1024xf32, #tpu.memory_space<vmem>>, vector<4x1024xf32>
    %c0_1 = arith.constant 0 : index
    %c0_2 = arith.constant 0 : index
    %1 = vector.load %arg2[%c0_1, %c0_2] : memref<4x1xf32, #tpu.memory_space<vmem>>, vector<4x1xf32>
    %2 = vector.broadcast %1 : vector<4x1xf32> to vector<4x1024xf32>
    %3 = arith.mulf %0, %2 : vector<4x1024xf32>
    %c0_3 = arith.constant 0 : index
    %c0_4 = arith.constant 0 : index
    %4 = vector.load %arg3[%c0_3, %c0_4] : memref<4x1xf32, #tpu.memory_space<vmem>>, vector<4x1xf32>
    %5 = vector.broadcast %4 : vector<4x1xf32> to vector<4x1024xf32>
    %6 = arith.addf %3, %5 : vector<4x1024xf32>
    %cst = arith.constant 0.000000e+00 : f32
    %7 = vector.broadcast %cst : f32 to vector<4x1024xf32>
    %8 = arith.maximumf %6, %7 : vector<4x1024xf32>
    %9 = arith.truncf %8 : vector<4x1024xf32> to vector<4x1024xbf16>
    %c0_5 = arith.constant 0 : index
    %c0_6 = arith.constant 0 : index
    %10 = vector.load %arg4[%c0_5, %c0_6] : memref<4x1024xbf16, #tpu.memory_space<vmem>>, vector<4x1024xbf16>
    tpu.vector_store %arg4[%c0_5, %c0_6], %9 {strides = array<i32>} : memref<4x1024xbf16, #tpu.memory_space<vmem>>, vector<4x1024xbf16>,
    return
  }
  func.func @transform_0(%arg0: i32) -> (i32, i32) {
    %c0_i32 = arith.constant 0 : i32
    %c0_i32_0 = arith.constant 0 : i32
    return %c0_i32, %arg0 : i32, i32
  }
  func.func @transform_1(%arg0: i32) -> (i32, i32) {
    %c0_i32 = arith.constant 0 : i32
    %c0_i32_0 = arith.constant 0 : i32
    %c0_i32_1 = arith.constant 0 : i32
    return %c0_i32, %c0_i32_0 : i32, i32
  }
  func.func @transform_2(%arg0: i32) -> (i32, i32) {
    %c0_i32 = arith.constant 0 : i32
    %c0_i32_0 = arith.constant 0 : i32
    %c0_i32_1 = arith.constant 0 : i32
    return %c0_i32, %c0_i32_0 : i32, i32
  }
  func.func @transform_3(%arg0: i32) -> (i32, i32) {
    %c0_i32 = arith.constant 0 : i32
    %c0_i32_0 = arith.constant 0 : i32
    return %c0_i32, %arg0 : i32, i32
  }
}

module attributes {stable_mosaic.version = 11 : i64} {
  func.func @conv_stats_kernel(%arg0: i32, %arg1: memref<2x112xbf16, #tpu.memory_space<vmem>>, %arg2: memref<112x1024xbf16, #tpu.memory_space<vmem>>, %arg3: memref<2x1024xf32, #tpu.memory_space<vmem>>, %arg4: memref<1x2x2xf32, #tpu.memory_space<vmem>>) attributes {dimension_semantics = [#tpu.dimension_semantics<parallel>], iteration_bounds = array<i64: 1>, scalar_prefetch = 0 : i64, scratch_operands = 0 : i64, tpu.core_type = #tpu.core_type<tc>, window_params = [{pipeline_mode = #tpu.pipeline_mode<synchronous>, transform_indices = @transform_0, window_bounds = array<i64: 2, 112>}, {transform_indices = @transform_1, window_bounds = array<i64: 112, 1024>}, {transform_indices = @transform_2, window_bounds = array<i64: 2, 1024>}, {transform_indices = @transform_3, window_bounds = array<i64: 1, 2, 2>}]} {
    %c0 = arith.constant 0 : index
    %c0_0 = arith.constant 0 : index
    %0 = vector.load %arg1[%c0, %c0_0] : memref<2x112xbf16, #tpu.memory_space<vmem>>, vector<2x112xbf16>
    %c0_1 = arith.constant 0 : index
    %c0_2 = arith.constant 0 : index
    %1 = vector.load %arg2[%c0_1, %c0_2] : memref<112x1024xbf16, #tpu.memory_space<vmem>>, vector<112x1024xbf16>
    %cst = arith.constant dense<0.000000e+00> : vector<2x1024xf32>
    %2 = tpu.matmul %0, %1, %cst {dimension_numbers = #tpu.dot_dimension_numbers<[1], [0], [0], [1], [0, 0, 1, 1], [], []>} : vector<2x112xbf16>, vector<112x1024xbf16>, vector<2x1024xf32> -> vector<2x1024xf32>
    %c0_3 = arith.constant 0 : index
    %c0_4 = arith.constant 0 : index
    %3 = vector.load %arg3[%c0_3, %c0_4] : memref<2x1024xf32, #tpu.memory_space<vmem>>, vector<2x1024xf32>
    tpu.vector_store %arg3[%c0_3, %c0_4], %2 {strides = array<i32>} : memref<2x1024xf32, #tpu.memory_space<vmem>>, vector<2x1024xf32>,
    %cst_5 = arith.constant dense<0.000000e+00> : vector<2xf32>
    %4 = vector.multi_reduction <add>, %2, %cst_5 [1] : vector<2x1024xf32> to vector<2xf32>
    %5 = vector.shape_cast %4 : vector<2xf32> to vector<2x1xf32>
    %6 = arith.mulf %2, %2 : vector<2x1024xf32>
    %cst_6 = arith.constant dense<0.000000e+00> : vector<2xf32>
    %7 = vector.multi_reduction <add>, %6, %cst_6 [1] : vector<2x1024xf32> to vector<2xf32>
    %8 = vector.shape_cast %7 : vector<2xf32> to vector<2x1xf32>
    %9 = tpu.concatenate %5, %8 in 1 : vector<2x1xf32>, vector<2x1xf32> -> vector<2x2xf32>
    %10 = vector.shape_cast %9 : vector<2x2xf32> to vector<1x2x2xf32>
    %c0_7 = arith.constant 0 : index
    %c0_8 = arith.constant 0 : index
    %c0_9 = arith.constant 0 : index
    %11 = vector.load %arg4[%c0_7, %c0_8, %c0_9] : memref<1x2x2xf32, #tpu.memory_space<vmem>>, vector<1x2x2xf32>
    tpu.vector_store %arg4[%c0_7, %c0_8, %c0_9], %10 {strides = array<i32>} : memref<1x2x2xf32, #tpu.memory_space<vmem>>, vector<1x2x2xf32>,
    return
  }
  func.func @transform_0(%arg0: i32) -> (i32, i32) {
    %c0_i32 = arith.constant 0 : i32
    %c0_i32_0 = arith.constant 0 : i32
    %c0_i32_1 = arith.constant 0 : i32
    return %c0_i32, %c0_i32_0 : i32, i32
  }
  func.func @transform_1(%arg0: i32) -> (i32, i32) {
    %c0_i32 = arith.constant 0 : i32
    %c0_i32_0 = arith.constant 0 : i32
    return %c0_i32, %arg0 : i32, i32
  }
  func.func @transform_2(%arg0: i32) -> (i32, i32) {
    %c0_i32 = arith.constant 0 : i32
    %c0_i32_0 = arith.constant 0 : i32
    return %c0_i32, %arg0 : i32, i32
  }
  func.func @transform_3(%arg0: i32) -> (i32, i32, i32) {
    %c0_i32 = arith.constant 0 : i32
    %c0_i32_0 = arith.constant 0 : i32
    %c0_i32_1 = arith.constant 0 : i32
    return %arg0, %c0_i32, %c0_i32_0 : i32, i32, i32
  }
}

module attributes {stable_mosaic.version = 11 : i64} {
  func.func @bn_relu_kernel(%arg0: i32, %arg1: memref<2x1024xf32, #tpu.memory_space<vmem>>, %arg2: memref<2x1xf32, #tpu.memory_space<vmem>>, %arg3: memref<2x1xf32, #tpu.memory_space<vmem>>, %arg4: memref<2x1024xbf16, #tpu.memory_space<vmem>>) attributes {dimension_semantics = [#tpu.dimension_semantics<parallel>], iteration_bounds = array<i64: 1>, scalar_prefetch = 0 : i64, scratch_operands = 0 : i64, tpu.core_type = #tpu.core_type<tc>, window_params = [{transform_indices = @transform_0, window_bounds = array<i64: 2, 1024>}, {pipeline_mode = #tpu.pipeline_mode<synchronous>, transform_indices = @transform_1, window_bounds = array<i64: 2, 1>}, {pipeline_mode = #tpu.pipeline_mode<synchronous>, transform_indices = @transform_2, window_bounds = array<i64: 2, 1>}, {transform_indices = @transform_3, window_bounds = array<i64: 2, 1024>}]} {
    %c0 = arith.constant 0 : index
    %c0_0 = arith.constant 0 : index
    %0 = vector.load %arg1[%c0, %c0_0] : memref<2x1024xf32, #tpu.memory_space<vmem>>, vector<2x1024xf32>
    %c0_1 = arith.constant 0 : index
    %c0_2 = arith.constant 0 : index
    %1 = vector.load %arg2[%c0_1, %c0_2] : memref<2x1xf32, #tpu.memory_space<vmem>>, vector<2x1xf32>
    %2 = vector.broadcast %1 : vector<2x1xf32> to vector<2x1024xf32>
    %3 = arith.mulf %0, %2 : vector<2x1024xf32>
    %c0_3 = arith.constant 0 : index
    %c0_4 = arith.constant 0 : index
    %4 = vector.load %arg3[%c0_3, %c0_4] : memref<2x1xf32, #tpu.memory_space<vmem>>, vector<2x1xf32>
    %5 = vector.broadcast %4 : vector<2x1xf32> to vector<2x1024xf32>
    %6 = arith.addf %3, %5 : vector<2x1024xf32>
    %cst = arith.constant 0.000000e+00 : f32
    %7 = vector.broadcast %cst : f32 to vector<2x1024xf32>
    %8 = arith.maximumf %6, %7 : vector<2x1024xf32>
    %9 = arith.truncf %8 : vector<2x1024xf32> to vector<2x1024xbf16>
    %c0_5 = arith.constant 0 : index
    %c0_6 = arith.constant 0 : index
    %10 = vector.load %arg4[%c0_5, %c0_6] : memref<2x1024xbf16, #tpu.memory_space<vmem>>, vector<2x1024xbf16>
    tpu.vector_store %arg4[%c0_5, %c0_6], %9 {strides = array<i32>} : memref<2x1024xbf16, #tpu.memory_space<vmem>>, vector<2x1024xbf16>,
    return
  }
  func.func @transform_0(%arg0: i32) -> (i32, i32) {
    %c0_i32 = arith.constant 0 : i32
    %c0_i32_0 = arith.constant 0 : i32
    return %c0_i32, %arg0 : i32, i32
  }
  func.func @transform_1(%arg0: i32) -> (i32, i32) {
    %c0_i32 = arith.constant 0 : i32
    %c0_i32_0 = arith.constant 0 : i32
    %c0_i32_1 = arith.constant 0 : i32
    return %c0_i32, %c0_i32_0 : i32, i32
  }
  func.func @transform_2(%arg0: i32) -> (i32, i32) {
    %c0_i32 = arith.constant 0 : i32
    %c0_i32_0 = arith.constant 0 : i32
    %c0_i32_1 = arith.constant 0 : i32
    return %c0_i32, %c0_i32_0 : i32, i32
  }
  func.func @transform_3(%arg0: i32) -> (i32, i32) {
    %c0_i32 = arith.constant 0 : i32
    %c0_i32_0 = arith.constant 0 : i32
    return %c0_i32, %arg0 : i32, i32
  }
}

module attributes {stable_mosaic.version = 11 : i64} {
  func.func @conv_tanh_kernel(%arg0: i32, %arg1: memref<1x56xbf16, #tpu.memory_space<vmem>>, %arg2: memref<56x1024xbf16, #tpu.memory_space<vmem>>, %arg3: memref<1x1024xf32, #tpu.memory_space<vmem>>) attributes {dimension_semantics = [#tpu.dimension_semantics<parallel>], iteration_bounds = array<i64: 1>, scalar_prefetch = 0 : i64, scratch_operands = 0 : i64, tpu.core_type = #tpu.core_type<tc>, window_params = [{pipeline_mode = #tpu.pipeline_mode<synchronous>, transform_indices = @transform_0, window_bounds = array<i64: 1, 56>}, {transform_indices = @transform_1, window_bounds = array<i64: 56, 1024>}, {transform_indices = @transform_2, window_bounds = array<i64: 1, 1024>}]} {
    %c0 = arith.constant 0 : index
    %c0_0 = arith.constant 0 : index
    %0 = vector.load %arg1[%c0, %c0_0] : memref<1x56xbf16, #tpu.memory_space<vmem>>, vector<1x56xbf16>
    %c0_1 = arith.constant 0 : index
    %c0_2 = arith.constant 0 : index
    %1 = vector.load %arg2[%c0_1, %c0_2] : memref<56x1024xbf16, #tpu.memory_space<vmem>>, vector<56x1024xbf16>
    %cst = arith.constant dense<0.000000e+00> : vector<1x1024xf32>
    %2 = tpu.matmul %0, %1, %cst {dimension_numbers = #tpu.dot_dimension_numbers<[1], [0], [0], [1], [0, 0, 1, 1], [], []>} : vector<1x56xbf16>, vector<56x1024xbf16>, vector<1x1024xf32> -> vector<1x1024xf32>
    %3 = math.tanh %2 : vector<1x1024xf32>
    %c0_3 = arith.constant 0 : index
    %c0_4 = arith.constant 0 : index
    %4 = vector.load %arg3[%c0_3, %c0_4] : memref<1x1024xf32, #tpu.memory_space<vmem>>, vector<1x1024xf32>
    tpu.vector_store %arg3[%c0_3, %c0_4], %3 {strides = array<i32>} : memref<1x1024xf32, #tpu.memory_space<vmem>>, vector<1x1024xf32>,
    return
  }
  func.func @transform_0(%arg0: i32) -> (i32, i32) {
    %c0_i32 = arith.constant 0 : i32
    %c0_i32_0 = arith.constant 0 : i32
    %c0_i32_1 = arith.constant 0 : i32
    return %c0_i32, %c0_i32_0 : i32, i32
  }
  func.func @transform_1(%arg0: i32) -> (i32, i32) {
    %c0_i32 = arith.constant 0 : i32
    %c0_i32_0 = arith.constant 0 : i32
    return %c0_i32, %arg0 : i32, i32
  }
  func.func @transform_2(%arg0: i32) -> (i32, i32) {
    %c0_i32 = arith.constant 0 : i32
    %c0_i32_0 = arith.constant 0 : i32
    return %c0_i32, %arg0 : i32, i32
  }
}

</mosaic_0001>

<bundles_post_ra>
// kernel: netG_forward.8
= control target key start
LH: loop header
LB: loop body
LE: loop exit
PB: predicated region body
PF: predicated region fallthrough
CT: control target
= control target key end

     0   :  { %v72_v0 = vmov 0   ;;  %s135_s1 = inlined_call_operand.vmem [shape: f32[8,1], index: 1, kind: input, shape index: {}]   ;;  %s136_s2 = inlined_call_operand.vmem [shape: f32[8,1], index: 2, kind: input, shape index: {}]   ;;  %s137_s0 = inlined_call_operand.vmem [shape: f32[8,1024], index: 0, kind: input, shape index: {}]   ;;  %s138_s3 = inlined_call_operand.vmem [shape: bf16[8,1024], index: 3, kind: output, shape index: {}]  }
   0x1   :  { %71 = vset.pattern.permute.xlu0 %v72_v0  ;;  %v22_v1 = vld [vmem:[%s135_s1] sm:$0xff]  ;;  %v15_v5 = vld [vmem:[%s137_s0 + $0x8] sm:$0xff]  ;;  %v16_v6 = vld [vmem:[%s137_s0 + $0x10] sm:$0xff] }
   0x2   :  { %25 = vperm.xlu0 %71, %v22_v1   ;;  %v36_v2 = vld [vmem:[%s136_s2] sm:$0xff]  ;;  %v17_v7 = vld [vmem:[%s137_s0 + $0x18] sm:$0xff]  ;;  %v19_v9 = vld [vmem:[%s137_s0 + $0x28] sm:$0xff] }
   0x3   :  { %v14_v4 = vld [vmem:[%s137_s0] sm:$0xff]  ;;  %v20_v10 = vld [vmem:[%s137_s0 + $0x30] sm:$0xff]  ;;  %v21_v11 = vld [vmem:[%s137_s0 + $0x38] sm:$0xff] }
   0x4   :  { %v18_v8 = vld [vmem:[%s137_s0 + $0x20] sm:$0xff] }
   0xa   :  { %39 = vperm.xlu0 %71, %v36_v2  }
  0x74   :  { %v26_v3 = vpop.permute.xlu0 %25 }
  0x75   :  { %v28_v12 = vmul.f32 %v26_v3, %v14_v4  ;;  %v29_v13 = vmul.f32 %v26_v3, %v15_v5  ;;  %v30_v14 = vmul.f32 %v26_v3, %v16_v6  ;;  %v31_v15 = vmul.f32 %v26_v3, %v17_v7 }
  0x76   :  { %v32_v17 = vmul.f32 %v26_v3, %v18_v8  ;;  %v33_v18 = vmul.f32 %v26_v3, %v19_v9  ;;  %v34_v19 = vmul.f32 %v26_v3, %v20_v10  ;;  %v35_v20 = vmul.f32 %v26_v3, %v21_v11 }
  0x7c   :  { %v40_v16 = vpop.permute.xlu0 %39 }
  0x7d   :  { %v42_v21 = vadd.f32 %v40_v16, %v28_v12  ;;  %v43_v22 = vadd.f32 %v40_v16, %v29_v13  ;;  %v44_v23 = vadd.f32 %v40_v16, %v30_v14  ;;  %v45_v24 = vadd.f32 %v40_v16, %v31_v15 }
  0x7e   :  { %v46_v25 = vadd.f32 %v40_v16, %v32_v17  ;;  %v47_v26 = vadd.f32 %v40_v16, %v33_v18  ;;  %v48_v27 = vadd.f32 %v40_v16, %v34_v19  ;;  %v49_v28 = vadd.f32 %v40_v16, %v35_v20 }
  0x7f   :  { %v50_v29 = vmax.f32 %v42_v21, 0.0  ;;  %v51_v30 = vmax.f32 %v43_v22, 0.0  ;;  %v52_v31 = vmax.f32 %v44_v23, 0.0  ;;  %v53_v32 = vmax.f32 %v45_v24, 0.0 }
  0x80   :  { %v54_v33 = vmax.f32 %v46_v25, 0.0  ;;  %v55_v34 = vmax.f32 %v47_v26, 0.0  ;;  %v56_v35 = vmax.f32 %v48_v27, 0.0  ;;  %v57_v36 = vmax.f32 %v49_v28, 0.0 }
  0x81   :  { %v58_v37 = vpack.c.bf16 %v51_v30, %v50_v29  ;;  %v59_v38 = vpack.c.bf16 %v53_v32, %v52_v31 }
  0x82   :  { %v60_v39 = vpack.c.bf16 %v55_v34, %v54_v33  ;;  %v61_v40 = vpack.c.bf16 %v57_v36, %v56_v35 }
  0x83   :  { %62 = vst [vmem:[%s138_s3] sm:$0xff] %v58_v37 }
  0x84   :  { %63 = vst [vmem:[%s138_s3 + $0x8] sm:$0xff] %v59_v38 }
  0x85   :  { %64 = vst [vmem:[%s138_s3 + $0x10] sm:$0xff] %v60_v39 }
  0x86   :  { %65 = vst [vmem:[%s138_s3 + $0x18] sm:$0xff] %v61_v40 }

// kernel: netG_forward.7
= control target key start
LH: loop header
LB: loop body
LE: loop exit
PB: predicated region body
PF: predicated region fallthrough
CT: control target
= control target key end

     0   :  { %vm536_vm0 = vcmask 7168   ;;  %vm538_vm1 = vcmask 15360   ;;  %s1312_s1 = inlined_call_operand.vmem [shape: bf16[128,1024], index: 1, kind: input, shape index: {}]   ;;  %s1313_s0 = inlined_call_operand.vmem [shape: bf16[8,128], index: 0, kind: input, shape index: {}]   ;;  %s1314_s2 = inlined_call_operand.vmem [shape: f32[8,1024], index: 2, kind: output, shape index: {0}]   ;;  %s1315_s3 = inlined_call_operand.vmem [shape: f32[1,8,2], index: 3, kind: output, shape index: {1}]  }
   0x1   :  { %v774_v0 = vld [vmem:[%s1312_s1 + $0x1c0] sm:$0xf]  ;;  %v860_v2 = vld [vmem:[%s1312_s1 + $0x1c4] sm:$0xf]  ;;  %v782_v5 = vld [vmem:[%s1312_s1 + $0x1c8] sm:$0xf] }
   0x2   :  { %v864_v1 = vld [vmem:[%s1312_s1 + $0x1dc] sm:$0xf0]  ;;  %v776_v4 = vld [vmem:[%s1312_s1 + $0x1e0] sm:$0xf0]  ;;  %v865_v6 = vld [vmem:[%s1312_s1 + $0x1e4] sm:$0xf0] }
   0x3   :  { %v775_v3 = vor.u32 %v864_v1, %v774_v0  ;;  %v779_v7 = vor.u32 %v860_v2, %v776_v4  ;;  %v783_v8 = vor.u32 %v865_v6, %v782_v5  ;;  %v861_v9 = vld [vmem:[%s1312_s1 + $0x1cc] sm:$0xf]  ;;  %v742_v11 = vld [vmem:[%s1312_s1 + $0x180] sm:$0xf]  ;;  %v852_v14 = vld [vmem:[%s1312_s1 + $0x184] sm:$0xf] }
   0x4   :  { %v784_v10 = vld [vmem:[%s1312_s1 + $0x1e8] sm:$0xf0]  ;;  %v856_v13 = vld [vmem:[%s1312_s1 + $0x19c] sm:$0xf0]  ;;  %v744_v15 = vld [vmem:[%s1312_s1 + $0x1a0] sm:$0xf0] }
   0x5   :  { %398 = vmatpush.bf16.msra.mxu0 %v775_v3  ;;  %v787_v12 = vor.u32 %v861_v9, %v784_v10  ;;  %411 = vmatpush.bf16.msra.mxu1 %v779_v7  ;;  %v743_v16 = vor.u32 %v856_v13, %v742_v11  ;;  %v747_v17 = vor.u32 %v852_v14, %v744_v15  ;;  %v750_v18 = vld [vmem:[%s1312_s1 + $0x188] sm:$0xf]  ;;  %v853_v20 = vld [vmem:[%s1312_s1 + $0x18c] sm:$0xf]  ;;  %v710_v23 = vld [vmem:[%s1312_s1 + $0x140] sm:$0xf] }
   0x6   :  { %424 = vmatpush.bf16.msra.mxu2 %v783_v8  ;;  %v857_v19 = vld [vmem:[%s1312_s1 + $0x1a4] sm:$0xf0]  ;;  %v752_v22 = vld [vmem:[%s1312_s1 + $0x1a8] sm:$0xf0]  ;;  %v848_v24 = vld [vmem:[%s1312_s1 + $0x15c] sm:$0xf0] }
   0x7   :  { %437 = vmatpush.bf16.msra.mxu3 %v787_v12  ;;  %v751_v21 = vor.u32 %v857_v19, %v750_v18  ;;  %v755_v25 = vor.u32 %v853_v20, %v752_v22  ;;  %v844_v26 = vld [vmem:[%s1312_s1 + $0x144] sm:$0xf]  ;;  %v718_v28 = vld [vmem:[%s1312_s1 + $0x148] sm:$0xf]  ;;  %v711_v29 = vor.u32 %v848_v24, %v710_v23  ;;  %v845_v31 = vld [vmem:[%s1312_s1 + $0x14c] sm:$0xf] }
   0x8   :  { %v712_v27 = vld [vmem:[%s1312_s1 + $0x160] sm:$0xf0]  ;;  %v849_v30 = vld [vmem:[%s1312_s1 + $0x164] sm:$0xf0]  ;;  %v720_v32 = vld [vmem:[%s1312_s1 + $0x168] sm:$0xf0] }
   0x9   :  { %399 = vmatpush.bf16.msra.mxu0 %v743_v16  ;;  %412 = vmatpush.bf16.msra.mxu1 %v747_v17  ;;  %v715_v33 = vor.u32 %v844_v26, %v712_v27  ;;  %v719_v34 = vor.u32 %v849_v30, %v718_v28  ;;  %v678_v35 = vld [vmem:[%s1312_s1 + $0x100] sm:$0xf]  ;;  %v836_v37 = vld [vmem:[%s1312_s1 + $0x104] sm:$0xf]  ;;  %v723_v38 = vor.u32 %v845_v31, %v720_v32  ;;  %v686_v40 = vld [vmem:[%s1312_s1 + $0x108] sm:$0xf] }
   0xa   :  { %425 = vmatpush.bf16.msra.mxu2 %v751_v21  ;;  %v840_v36 = vld [vmem:[%s1312_s1 + $0x11c] sm:$0xf0]  ;;  %v680_v39 = vld [vmem:[%s1312_s1 + $0x120] sm:$0xf0]  ;;  %v841_v41 = vld [vmem:[%s1312_s1 + $0x124] sm:$0xf0] }
   0xb   :  { %438 = vmatpush.bf16.msra.mxu3 %v755_v25  ;;  %v837_v42 = vld [vmem:[%s1312_s1 + $0x10c] sm:$0xf]  ;;  %v679_v44 = vor.u32 %v840_v36, %v678_v35  ;;  %v683_v45 = vor.u32 %v836_v37, %v680_v39  ;;  %v687_v46 = vor.u32 %v841_v41, %v686_v40  ;;  %v646_v47 = vld [vmem:[%s1312_s1 + $0xc0] sm:$0xf]  ;;  %v828_v49 = vld [vmem:[%s1312_s1 + $0xc4] sm:$0xf] }
   0xc   :  { %v688_v43 = vld [vmem:[%s1312_s1 + $0x128] sm:$0xf0]  ;;  %v832_v48 = vld [vmem:[%s1312_s1 + $0xdc] sm:$0xf0]  ;;  %v648_v51 = vld [vmem:[%s1312_s1 + $0xe0] sm:$0xf0] }
   0xd   :  { %400 = vmatpush.bf16.msra.mxu0 %v711_v29  ;;  %413 = vmatpush.bf16.msra.mxu1 %v715_v33  ;;  %v691_v50 = vor.u32 %v837_v42, %v688_v43  ;;  %v654_v52 = vld [vmem:[%s1312_s1 + $0xc8] sm:$0xf]  ;;  %v829_v54 = vld [vmem:[%s1312_s1 + $0xcc] sm:$0xf]  ;;  %v647_v56 = vor.u32 %v832_v48, %v646_v47  ;;  %v651_v57 = vor.u32 %v828_v49, %v648_v51  ;;  %v614_v59 = vld [vmem:[%s1312_s1 + $0x80] sm:$0xf] }
   0xe   :  { %426 = vmatpush.bf16.msra.mxu2 %v719_v34  ;;  %v833_v53 = vld [vmem:[%s1312_s1 + $0xe4] sm:$0xf0]  ;;  %v656_v55 = vld [vmem:[%s1312_s1 + $0xe8] sm:$0xf0]  ;;  %v824_v60 = vld [vmem:[%s1312_s1 + $0x9c] sm:$0xf0] }
   0xf   :  { %439 = vmatpush.bf16.msra.mxu3 %v723_v38  ;;  %v655_v58 = vor.u32 %v833_v53, %v654_v52  ;;  %v820_v61 = vld [vmem:[%s1312_s1 + $0x84] sm:$0xf]  ;;  %v659_v62 = vor.u32 %v829_v54, %v656_v55  ;;  %v622_v0 = vld [vmem:[%s1312_s1 + $0x88] sm:$0xf]  ;;  %v821_v2 = vld [vmem:[%s1312_s1 + $0x8c] sm:$0xf]  ;;  %v615_v4 = vor.u32 %v824_v60, %v614_v59 }
  0x10   :  { %v616_v63 = vld [vmem:[%s1312_s1 + $0xa0] sm:$0xf0]  ;;  %v825_v1 = vld [vmem:[%s1312_s1 + $0xa4] sm:$0xf0]  ;;  %v624_v3 = vld [vmem:[%s1312_s1 + $0xa8] sm:$0xf0] }
  0x11   :  { %401 = vmatpush.bf16.msra.mxu0 %v679_v44  ;;  %414 = vmatpush.bf16.msra.mxu1 %v683_v45  ;;  %v619_v5 = vor.u32 %v820_v61, %v616_v63  ;;  %v623_v6 = vor.u32 %v825_v1, %v622_v0  ;;  %v582_v7 = vld [vmem:[%s1312_s1 + $0x40] sm:$0xf]  ;;  %v812_v9 = vld [vmem:[%s1312_s1 + $0x44] sm:$0xf]  ;;  %v627_v10 = vor.u32 %v821_v2, %v624_v3  ;;  %v590_v12 = vld [vmem:[%s1312_s1 + $0x48] sm:$0xf] }
  0x12   :  { %427 = vmatpush.bf16.msra.mxu2 %v687_v46  ;;  %v816_v8 = vld [vmem:[%s1312_s1 + $0x5c] sm:$0xf0]  ;;  %v584_v11 = vld [vmem:[%s1312_s1 + $0x60] sm:$0xf0]  ;;  %v817_v13 = vld [vmem:[%s1312_s1 + $0x64] sm:$0xf0] }
  0x13   :  { %440 = vmatpush.bf16.msra.mxu3 %v691_v50  ;;  %v813_v14 = vld [vmem:[%s1312_s1 + $0x4c] sm:$0xf]  ;;  %v583_v16 = vor.u32 %v816_v8, %v582_v7  ;;  %v550_v17 = vld [vmem:[%s1312_s1] sm:$0xf]  ;;  %v587_v19 = vor.u32 %v812_v9, %v584_v11  ;;  %v591_v20 = vor.u32 %v817_v13, %v590_v12  ;;  %v804_v21 = vld [vmem:[%s1312_s1 + $0x4] sm:$0xf] }
  0x14   :  { %v592_v15 = vld [vmem:[%s1312_s1 + $0x68] sm:$0xf0]  ;;  %v808_v18 = vld [vmem:[%s1312_s1 + $0x1c] sm:$0xf0]  ;;  %v552_v22 = vld [vmem:[%s1312_s1 + $0x20] sm:$0xf0] }
  0x15   :  { %402 = vmatpush.bf16.msra.mxu0 %v647_v56  ;;  %415 = vmatpush.bf16.msra.mxu1 %v651_v57  ;;  %v558_v23 = vld [vmem:[%s1312_s1 + $0x8] sm:$0xf]  ;;  %v595_v24 = vor.u32 %v813_v14, %v592_v15  ;;  %v805_v26 = vld [vmem:[%s1312_s1 + $0xc] sm:$0xf]  ;;  %v790_v28 = vld [vmem:[%s1312_s1 + $0x1d0] sm:$0xf]  ;;  %v551_v31 = vor.u32 %v808_v18, %v550_v17  ;;  %v555_v35 = vor.u32 %v804_v21, %v552_v22 }
  0x16   :  { %428 = vmatpush.bf16.msra.mxu2 %v655_v58  ;;  %v809_v25 = vld [vmem:[%s1312_s1 + $0x24] sm:$0xf0]  ;;  %v560_v27 = vld [vmem:[%s1312_s1 + $0x28] sm:$0xf0]  ;;  %v866_v29 = vld [vmem:[%s1312_s1 + $0x1ec] sm:$0xf0] }
  0x17   :  { %441 = vmatpush.bf16.msra.mxu3 %v659_v62  ;;  %v862_v30 = vld [vmem:[%s1312_s1 + $0x1d4] sm:$0xf]  ;;  %v798_v33 = vld [vmem:[%s1312_s1 + $0x1d8] sm:$0xf]  ;;  %v559_v36 = vor.u32 %v809_v25, %v558_v23  ;;  %v863_v37 = vld [vmem:[%s1312_s1 + $0x1dc] sm:$0xf]  ;;  %v563_v39 = vor.u32 %v805_v26, %v560_v27  ;;  %v791_v40 = vor.u32 %v866_v29, %v790_v28 }
  0x18   :  { %v792_v32 = vld [vmem:[%s1312_s1 + $0x1f0] sm:$0xf0]  ;;  %v867_v34 = vld [vmem:[%s1312_s1 + $0x1f4] sm:$0xf0]  ;;  %v800_v38 = vld [vmem:[%s1312_s1 + $0x1f8] sm:$0xf0] }
  0x19   :  { %403 = vmatpush.bf16.msra.mxu0 %v615_v4  ;;  %416 = vmatpush.bf16.msra.mxu1 %v619_v5  ;;  %v795_v41 = vor.u32 %v862_v30, %v792_v32  ;;  %v799_v42 = vor.u32 %v867_v34, %v798_v33  ;;  %v758_v43 = vld [vmem:[%s1312_s1 + $0x190] sm:$0xf]  ;;  %v854_v45 = vld [vmem:[%s1312_s1 + $0x194] sm:$0xf]  ;;  %v803_v46 = vor.u32 %v863_v37, %v800_v38  ;;  %v766_v48 = vld [vmem:[%s1312_s1 + $0x198] sm:$0xf] }
  0x1a   :  { %429 = vmatpush.bf16.msra.mxu2 %v623_v6  ;;  %v858_v44 = vld [vmem:[%s1312_s1 + $0x1ac] sm:$0xf0]  ;;  %v760_v47 = vld [vmem:[%s1312_s1 + $0x1b0] sm:$0xf0]  ;;  %v859_v49 = vld [vmem:[%s1312_s1 + $0x1b4] sm:$0xf0] }
  0x1b   :  { %442 = vmatpush.bf16.msra.mxu3 %v627_v10  ;;  %v855_v50 = vld [vmem:[%s1312_s1 + $0x19c] sm:$0xf]  ;;  %v1131_v52 = vld [vmem:[%s1313_s0] sm:$0xf]  ;;  %v759_v53 = vor.u32 %v858_v44, %v758_v43  ;;  %v763_v54 = vor.u32 %v854_v45, %v760_v47  ;;  %v767_v55 = vor.u32 %v859_v49, %v766_v48  ;;  %v726_v56 = vld [vmem:[%s1312_s1 + $0x150] sm:$0xf] }
  0x1c   :  { %v768_v51 = vld [vmem:[%s1312_s1 + $0x1b8] sm:$0xf0]  ;;  %v850_v57 = vld [vmem:[%s1312_s1 + $0x16c] sm:$0xf0]  ;;  %v846_v58 = vld [vmem:[%s1312_s1 + $0x154] sm:$0xf] }
  0x1d   :  { %404 = vmatpush.bf16.msra.mxu0 %v583_v16  ;;  %417 = vmatpush.bf16.msra.mxu1 %v587_v19  ;;  %v771_v59 = vor.u32 %v855_v50, %v768_v51  ;;  %v728_v60 = vld [vmem:[%s1312_s1 + $0x170] sm:$0xf0]  ;;  %v734_v61 = vld [vmem:[%s1312_s1 + $0x158] sm:$0xf]  ;;  %v847_v63 = vld [vmem:[%s1312_s1 + $0x15c] sm:$0xf]  ;;  %v727_v1 = vor.u32 %v850_v57, %v726_v56 }
  0x1e   :  { %430 = vmatpush.bf16.msra.mxu2 %v591_v20  ;;  %v851_v62 = vld [vmem:[%s1312_s1 + $0x174] sm:$0xf0]  ;;  %v736_v0 = vld [vmem:[%s1312_s1 + $0x178] sm:$0xf0]  ;;  %v731_v2 = vor.u32 %v846_v58, %v728_v60  ;;  %v694_v4 = vld [vmem:[%s1312_s1 + $0x110] sm:$0xf] }
  0x1f   :  { %443 = vmatpush.bf16.msra.mxu3 %v595_v24  ;;  %v735_v3 = vor.u32 %v851_v62, %v734_v61  ;;  %v842_v5 = vld [vmem:[%s1312_s1 + $0x12c] sm:$0xf0]  ;;  %v838_v6 = vld [vmem:[%s1312_s1 + $0x114] sm:$0xf]  ;;  %v739_v7 = vor.u32 %v847_v63, %v736_v0  ;;  %v702_v9 = vld [vmem:[%s1312_s1 + $0x118] sm:$0xf] }
  0x20   :  { %v696_v8 = vld [vmem:[%s1312_s1 + $0x130] sm:$0xf0]  ;;  %v843_v10 = vld [vmem:[%s1312_s1 + $0x134] sm:$0xf0]  ;;  %v839_v11 = vld [vmem:[%s1312_s1 + $0x11c] sm:$0xf]  ;;  %v695_v13 = vor.u32 %v842_v5, %v694_v4 }
  0x21   :  { %405 = vmatpush.bf16.msra.mxu0 %v551_v31  ;;  %418 = vmatpush.bf16.msra.mxu1 %v555_v35  ;;  %v704_v12 = vld [vmem:[%s1312_s1 + $0x138] sm:$0xf0]  ;;  %v699_v14 = vor.u32 %v838_v6, %v696_v8  ;;  %v703_v15 = vor.u32 %v843_v10, %v702_v9  ;;  %v662_v16 = vld [vmem:[%s1312_s1 + $0xd0] sm:$0xf]  ;;  %v830_v18 = vld [vmem:[%s1312_s1 + $0xd4] sm:$0xf] }
  0x22   :  { %431 = vmatpush.bf16.msra.mxu2 %v559_v36  ;;  %v834_v17 = vld [vmem:[%s1312_s1 + $0xec] sm:$0xf0]  ;;  %v707_v19 = vor.u32 %v839_v11, %v704_v12  ;;  %v664_v20 = vld [vmem:[%s1312_s1 + $0xf0] sm:$0xf0]  ;;  %v670_v21 = vld [vmem:[%s1312_s1 + $0xd8] sm:$0xf] }
  0x23   :  { %444 = vmatpush.bf16.msra.mxu3 %v563_v39  ;;  %v835_v22 = vld [vmem:[%s1312_s1 + $0xf4] sm:$0xf0]  ;;  %v831_v23 = vld [vmem:[%s1312_s1 + $0xdc] sm:$0xf]  ;;  %v663_v25 = vor.u32 %v834_v17, %v662_v16  ;;  %v667_v26 = vor.u32 %v830_v18, %v664_v20  ;;  %v630_v28 = vld [vmem:[%s1312_s1 + $0x90] sm:$0xf] }
  0x24   :  { %406 = vmatmul.bf16.vlgmr.msra.gmra.mxu0 %v1131_v52  ;;  %419 = vmatmul.bf16.vlgmr.msra.gmra.mxu1 %v1131_v52  ;;  %v672_v24 = vld [vmem:[%s1312_s1 + $0xf8] sm:$0xf0]  ;;  %v671_v27 = vor.u32 %v835_v22, %v670_v21  ;;  %v826_v29 = vld [vmem:[%s1312_s1 + $0xac] sm:$0xf0]  ;;  %v822_v30 = vld [vmem:[%s1312_s1 + $0x94] sm:$0xf] }
  0x25   :  { %450 = vmatpush.bf16.msrb.mxu0 %v791_v40  ;;  %463 = vmatpush.bf16.msrb.mxu1 %v795_v41  ;;  %v675_v31 = vor.u32 %v831_v23, %v672_v24  ;;  %v632_v32 = vld [vmem:[%s1312_s1 + $0xb0] sm:$0xf0]  ;;  %v638_v33 = vld [vmem:[%s1312_s1 + $0x98] sm:$0xf]  ;;  %v823_v35 = vld [vmem:[%s1312_s1 + $0x9c] sm:$0xf]  ;;  %v631_v37 = vor.u32 %v826_v29, %v630_v28 }
  0x26   :  { %476 = vmatpush.bf16.msrb.mxu2 %v799_v42  ;;  %445 = vmatmul.bf16.vlgmr.msra.gmra.mxu3 %v1131_v52  ;;  %v827_v34 = vld [vmem:[%s1312_s1 + $0xb4] sm:$0xf0]  ;;  %v640_v36 = vld [vmem:[%s1312_s1 + $0xb8] sm:$0xf0]  ;;  %v635_v38 = vor.u32 %v822_v30, %v632_v32  ;;  %v598_v40 = vld [vmem:[%s1312_s1 + $0x50] sm:$0xf] }
  0x27   :  { %489 = vmatpush.bf16.msrb.mxu3 %v803_v46  ;;  %432 = vmatmul.bf16.vlgmr.msra.gmra.mxu2 %v1131_v52  ;;  %v639_v39 = vor.u32 %v827_v34, %v638_v33  ;;  %v818_v41 = vld [vmem:[%s1312_s1 + $0x6c] sm:$0xf0]  ;;  %v814_v42 = vld [vmem:[%s1312_s1 + $0x54] sm:$0xf]  ;;  %v643_v43 = vor.u32 %v823_v35, %v640_v36  ;;  %v606_v45 = vld [vmem:[%s1312_s1 + $0x58] sm:$0xf] }
  0x28   :  { %v600_v44 = vld [vmem:[%s1312_s1 + $0x70] sm:$0xf0]  ;;  %v819_v46 = vld [vmem:[%s1312_s1 + $0x74] sm:$0xf0]  ;;  %v815_v47 = vld [vmem:[%s1312_s1 + $0x5c] sm:$0xf]  ;;  %v599_v49 = vor.u32 %v818_v41, %v598_v40 }
  0x29   :  { %451 = vmatpush.bf16.msrb.mxu0 %v759_v53  ;;  %464 = vmatpush.bf16.msrb.mxu1 %v763_v54  ;;  %v608_v48 = vld [vmem:[%s1312_s1 + $0x78] sm:$0xf0]  ;;  %v603_v50 = vor.u32 %v814_v42, %v600_v44  ;;  %v607_v51 = vor.u32 %v819_v46, %v606_v45  ;;  %v566_v53 = vld [vmem:[%s1312_s1 + $0x10] sm:$0xf]  ;;  %v568_v57 = vld [vmem:[%s1312_s1 + $0x30] sm:$0xf0] }
  0x2a   :  { %477 = vmatpush.bf16.msrb.mxu2 %v767_v55  ;;  %v810_v54 = vld [vmem:[%s1312_s1 + $0x2c] sm:$0xf0]  ;;  %v806_v55 = vld [vmem:[%s1312_s1 + $0x14] sm:$0xf]  ;;  %v611_v56 = vor.u32 %v815_v47, %v608_v48  ;;  %v574_v58 = vld [vmem:[%s1312_s1 + $0x18] sm:$0xf] }
  0x2b   :  { %490 = vmatpush.bf16.msrb.mxu3 %v771_v59  ;;  %v811_v59 = vld [vmem:[%s1312_s1 + $0x34] sm:$0xf0]  ;;  %v807_v60 = vld [vmem:[%s1312_s1 + $0x1c] sm:$0xf]  ;;  %v567_v62 = vor.u32 %v810_v54, %v566_v53  ;;  %v571_v63 = vor.u32 %v806_v55, %v568_v57 }
  0x2c   :  { %v576_v61 = vld [vmem:[%s1312_s1 + $0x38] sm:$0xf0]  ;;  %v575_v0 = vor.u32 %v811_v59, %v574_v58 }
  0x2d   :  { %452 = vmatpush.bf16.msrb.mxu0 %v727_v1  ;;  %465 = vmatpush.bf16.msrb.mxu1 %v731_v2  ;;  %v579_v1 = vor.u32 %v807_v60, %v576_v61 }
  0x2e   :  { %478 = vmatpush.bf16.msrb.mxu2 %v735_v3 }
  0x2f   :  { %491 = vmatpush.bf16.msrb.mxu3 %v739_v7 }
  0x31   :  { %453 = vmatpush.bf16.msrb.mxu0 %v695_v13  ;;  %466 = vmatpush.bf16.msrb.mxu1 %v699_v14 }
  0x32   :  { %479 = vmatpush.bf16.msrb.mxu2 %v703_v15 }
  0x33   :  { %492 = vmatpush.bf16.msrb.mxu3 %v707_v19 }
  0x35   :  { %454 = vmatpush.bf16.msrb.mxu0 %v663_v25  ;;  %467 = vmatpush.bf16.msrb.mxu1 %v667_v26 }
  0x36   :  { %480 = vmatpush.bf16.msrb.mxu2 %v671_v27 }
  0x37   :  { %493 = vmatpush.bf16.msrb.mxu3 %v675_v31 }
  0x39   :  { %455 = vmatpush.bf16.msrb.mxu0 %v631_v37  ;;  %468 = vmatpush.bf16.msrb.mxu1 %v635_v38 }
  0x3a   :  { %481 = vmatpush.bf16.msrb.mxu2 %v639_v39 }
  0x3b   :  { %494 = vmatpush.bf16.msrb.mxu3 %v643_v43 }
  0x3d   :  { %456 = vmatpush.bf16.msrb.mxu0 %v599_v49  ;;  %469 = vmatpush.bf16.msrb.mxu1 %v603_v50 }
  0x3e   :  { %482 = vmatpush.bf16.msrb.mxu2 %v607_v51 }
  0x3f   :  { %495 = vmatpush.bf16.msrb.mxu3 %v611_v56 }
  0x41   :  { %457 = vmatpush.bf16.msrb.mxu0 %v567_v62  ;;  %470 = vmatpush.bf16.msrb.mxu1 %v571_v63 }
  0x42   :  { %483 = vmatpush.bf16.msrb.mxu2 %v575_v0 }
  0x43   :  { %496 = vmatpush.bf16.msrb.mxu3 %v579_v1 }
  0x44   :  { %458 = vmatmul.bf16.vlgmr.msrb.gmra.mxu0 %v1131_v52  ;;  %471 = vmatmul.bf16.vlgmr.msrb.gmra.mxu1 %v1131_v52 }
  0x45   :  { %484 = vmatmul.bf16.vlgmr.msrb.gmra.mxu2 %v1131_v52 }
  0x46   :  { %497 = vmatmul.bf16.vlgmr.msrb.gmra.mxu3 %v1131_v52 }
  0xa1   :  { %v407_v2 = vpop.f32.mrf.mxu0  ;;  %v420_v3 = vpop.f32.mrf.mxu1 }
  0xa2   :  { %502 = vst [vmem:[%s1314_s2] sm:$0xff] %v407_v2  ;;  %v510_v9 = vadd.f32 %v420_v3, %v407_v2  ;;  %v519_v10 = vmul.f32 %v407_v2, %v407_v2  ;;  %v520_v11 = vmul.f32 %v420_v3, %v420_v3 }
  0xa3   :  { %503 = vst [vmem:[%s1314_s2 + $0x8] sm:$0xff] %v420_v3 }
  0xa4   :  { %v527_v13 = vadd.f32 %v520_v11, %v519_v10 }
  0xa9   :  { %v446_v5 = vpop.f32.mrf.mxu3  ;;  %v409_v52 = vpop.f32.mrf.mxu0 }
  0xaa   :  { %v433_v4 = vpop.f32.mrf.mxu2  ;;  %505 = vst [vmem:[%s1314_s2 + $0x18] sm:$0xff] %v446_v5  ;;  %v422_v6 = vpop.f32.mrf.mxu1  ;;  %v522_v19 = vmul.f32 %v446_v5, %v446_v5 }
  0xab   :  { %504 = vst [vmem:[%s1314_s2 + $0x10] sm:$0xff] %v433_v4  ;;  %v511_v12 = vadd.f32 %v510_v9, %v433_v4  ;;  %v521_v14 = vmul.f32 %v433_v4, %v433_v4 }
  0xad   :  { %v512_v15 = vadd.f32 %v511_v12, %v446_v5  ;;  %v528_v18 = vadd.f32 %v527_v13, %v521_v14 }
  0xaf   :  { %v529_v22 = vadd.f32 %v528_v18, %v522_v19 }
  0xb1   :  { %v448_v8 = vpop.f32.mrf.mxu3 }
  0xb2   :  { %v435_v7 = vpop.f32.mrf.mxu2 }
  0xc1   :  { %v459_v16 = vpop.f32.mrf.mxu0  ;;  %v472_v17 = vpop.f32.mrf.mxu1 }
  0xc2   :  { %506 = vst [vmem:[%s1314_s2 + $0x20] sm:$0xff] %v459_v16  ;;  %v513_v20 = vadd.f32 %v512_v15, %v459_v16  ;;  %v523_v21 = vmul.f32 %v459_v16, %v459_v16  ;;  %v524_v26 = vmul.f32 %v472_v17, %v472_v17 }
  0xc3   :  { %507 = vst [vmem:[%s1314_s2 + $0x28] sm:$0xff] %v472_v17 }
  0xc4   :  { %v514_v23 = vadd.f32 %v513_v20, %v472_v17  ;;  %v530_v25 = vadd.f32 %v529_v22, %v523_v21 }
  0xc6   :  { %v531_v33 = vadd.f32 %v530_v25, %v524_v26 }
  0xc8   :  { %v485_v24 = vpop.f32.mrf.mxu2 }
  0xc9   :  { %508 = vst [vmem:[%s1314_s2 + $0x30] sm:$0xff] %v485_v24  ;;  %v498_v27 = vpop.f32.mrf.mxu3  ;;  %v461_v28 = vpop.f32.mrf.mxu0  ;;  %v515_v29 = vadd.f32 %v514_v23, %v485_v24  ;;  %v525_v31 = vmul.f32 %v485_v24, %v485_v24 }
  0xca   :  { %509 = vst [vmem:[%s1314_s2 + $0x38] sm:$0xff] %v498_v27  ;;  %v474_v30 = vpop.f32.mrf.mxu1  ;;  %v526_v34 = vmul.f32 %v498_v27, %v498_v27 }
  0xcb   :  { %v516_v32 = vadd.f32 %v515_v29, %v498_v27  ;;  %v532_v35 = vadd.f32 %v531_v33, %v525_v31 }
  0xcd   :  { %517 = vadd.xlane.f32.xlu0 %v516_v32  ;;  %v533_v38 = vadd.f32 %v532_v35, %v526_v34 }
  0xd0   :  { %v487_v36 = vpop.f32.mrf.mxu2 }
  0xd1   :  { %v500_v37 = vpop.f32.mrf.mxu3 }
  0xd5   :  { %534 = vadd.xlane.f32.xlu0 %v533_v38 }
 0x140   :  { %v518_v39 = vpop.xlane.xlu0 %517 }
 0x148   :  { %v535_v40 = vpop.xlane.xlu0 %534 }
 0x149   :  { %v537_v41 = vsel %vm536_vm0, %v518_v39, %v535_v40 }
 0x14a   :  { %539 = vst.msk [vmem:[%s1315_s3] sm:$0xff] %vm538_vm1, %v537_v41 }

// kernel: netG_forward.9
= control target key start
LH: loop header
LB: loop body
LE: loop exit
PB: predicated region body
PF: predicated region fallthrough
CT: control target
= control target key end

     0   :  { %vm671_vm0 = vcmask 1043456   ;;  %vm668_vm1 = vcmask 719872   ;;  %vm970_vm2 = vcmask 7168   ;;  %vm972_vm3 = vcmask 11264   ;;  %s2248_s1 = inlined_call_operand.vmem [shape: bf16[216,1024], index: 1, kind: input, shape index: {}]   ;;  %s2249_s0 = inlined_call_operand.vmem [shape: bf16[4,216], index: 0, kind: input, shape index: {}]   ;;  %s2250_s2 = inlined_call_operand.vmem [shape: f32[4,1024], index: 2, kind: output, shape index: {0}]   ;;  %s2251_s3 = inlined_call_operand.vmem [shape: f32[1,4,2], index: 3, kind: output, shape index: {1}]  }
   0x1   :  { %v1208_v0 = vld [vmem:[%s2248_s1 + $0x1c0] sm:$0xf]  ;;  %v1462_v2 = vld [vmem:[%s2248_s1 + $0x1c4] sm:$0xf]  ;;  %v120_v63 = vld [vmem:[%s2248_s1 + $0x348] sm:$0xff] }
   0x2   :  { %v1466_v1 = vld [vmem:[%s2248_s1 + $0x1dc] sm:$0xf0]  ;;  %v1210_v4 = vld [vmem:[%s2248_s1 + $0x1e0] sm:$0xf0] }
   0x3   :  { %v1209_v3 = vor.u32 %v1466_v1, %v1208_v0  ;;  %v119_v5 = vld [vmem:[%s2248_s1 + $0x340] sm:$0xff]  ;;  %v1213_v7 = vor.u32 %v1462_v2, %v1210_v4  ;;  %v446_v0 = vunpack.c.l.b16 %v120_v63 }
   0x4   :  { %v1176_v6 = vld [vmem:[%s2248_s1 + $0x180] sm:$0xf]  ;;  %v444_v8 = vunpack.c.l.b16 %v119_v5  ;;  %v445_v9 = vunpack.c.h.b16 %v119_v5  ;;  %v1454_v11 = vld [vmem:[%s2248_s1 + $0x184] sm:$0xf] }
   0x5   :  { %v1458_v10 = vld [vmem:[%s2248_s1 + $0x19c] sm:$0xf0]  ;;  %v1178_v12 = vld [vmem:[%s2248_s1 + $0x1a0] sm:$0xf0]  ;;  %696 = vmatpush.bf16.msra.mxu0 %v1209_v3  ;;  %722 = vmatpush.bf16.msra.mxu2 %v1213_v7 }
   0x6   :  { %v1368_v13 = vld [vmem:[%s2248_s1 + $0x300] sm:$0xf]  ;;  %v556_v15 = vpack.c.b16 %v444_v8, %v444_v8  ;;  %v557_v16 = vpack.c.b16 %v445_v9, %v445_v9  ;;  %v1177_v17 = vor.u32 %v1458_v10, %v1176_v6  ;;  %v1181_v18 = vor.u32 %v1454_v11, %v1178_v12  ;;  %v1502_v19 = vld [vmem:[%s2248_s1 + $0x304] sm:$0xf] }
   0x7   :  { %v1506_v14 = vld [vmem:[%s2248_s1 + $0x31c] sm:$0xf0]  ;;  %v1370_v20 = vld [vmem:[%s2248_s1 + $0x320] sm:$0xf0] }
   0x8   :  { %v1144_v21 = vld [vmem:[%s2248_s1 + $0x140] sm:$0xf]  ;;  %v1446_v23 = vld [vmem:[%s2248_s1 + $0x144] sm:$0xf]  ;;  %v673_v25 = vsel %vm671_vm0, %v556_v15, 0  ;;  %v676_v26 = vsel %vm671_vm0, %v557_v16, 0  ;;  %v1369_v27 = vor.u32 %v1506_v14, %v1368_v13  ;;  %v1373_v28 = vor.u32 %v1502_v19, %v1370_v20 }
   0x9   :  { %v1450_v22 = vld [vmem:[%s2248_s1 + $0x15c] sm:$0xf0]  ;;  %v1146_v24 = vld [vmem:[%s2248_s1 + $0x160] sm:$0xf0]  ;;  %711 = vmatpush.bf16.msra.mxu1 %v673_v25  ;;  %737 = vmatpush.bf16.msra.mxu3 %v676_v26  ;;  %v1216_v13 = vld [vmem:[%s2248_s1 + $0x1c8] sm:$0xf]  ;;  %v558_v15 = vpack.c.b16 %v446_v0, %v446_v0  ;;  %v447_v16 = vunpack.c.h.b16 %v120_v63 }
   0xa   :  { %v1336_v29 = vld [vmem:[%s2248_s1 + $0x2c0] sm:$0xf]  ;;  %697 = vmatpush.bf16.msra.mxu0 %v1177_v17  ;;  %723 = vmatpush.bf16.msra.mxu2 %v1181_v18  ;;  %v1145_v31 = vor.u32 %v1450_v22, %v1144_v21  ;;  %v1149_v32 = vor.u32 %v1446_v23, %v1146_v24  ;;  %v1494_v33 = vld [vmem:[%s2248_s1 + $0x2c4] sm:$0xf]  ;;  %v1467_v14 = vld [vmem:[%s2248_s1 + $0x1e4] sm:$0xf0] }
   0xb   :  { %v1498_v30 = vld [vmem:[%s2248_s1 + $0x2dc] sm:$0xf0]  ;;  %v1338_v34 = vld [vmem:[%s2248_s1 + $0x2e0] sm:$0xf0]  ;;  %v1217_v26 = vor.u32 %v1467_v14, %v1216_v13  ;;  %v1056_v13 = vld [vmem:[%s2248_s1 + $0x88] sm:$0xf] }
   0xc   :  { %v1112_v35 = vld [vmem:[%s2248_s1 + $0x100] sm:$0xf]  ;;  %v1438_v37 = vld [vmem:[%s2248_s1 + $0x104] sm:$0xf]  ;;  %v1337_v39 = vor.u32 %v1498_v30, %v1336_v29  ;;  %v1341_v40 = vor.u32 %v1494_v33, %v1338_v34  ;;  %v679_v29 = vsel %vm671_vm0, %v558_v15, 0 }
   0xd   :  { %v1442_v36 = vld [vmem:[%s2248_s1 + $0x11c] sm:$0xf0]  ;;  %v1114_v38 = vld [vmem:[%s2248_s1 + $0x120] sm:$0xf0]  ;;  %712 = vmatpush.bf16.msra.mxu1 %v1369_v27  ;;  %738 = vmatpush.bf16.msra.mxu3 %v1373_v28  ;;  %v1184_v27 = vld [vmem:[%s2248_s1 + $0x188] sm:$0xf] }
   0xe   :  { %v1304_v41 = vld [vmem:[%s2248_s1 + $0x280] sm:$0xf]  ;;  %698 = vmatpush.bf16.msra.mxu0 %v1145_v31  ;;  %724 = vmatpush.bf16.msra.mxu2 %v1149_v32  ;;  %v1113_v43 = vor.u32 %v1442_v36, %v1112_v35  ;;  %v1117_v44 = vor.u32 %v1438_v37, %v1114_v38  ;;  %v1486_v45 = vld [vmem:[%s2248_s1 + $0x284] sm:$0xf]  ;;  %v1459_v28 = vld [vmem:[%s2248_s1 + $0x1a4] sm:$0xf0]  ;;  %v559_v32 = vpack.c.b16 %v447_v16, %v447_v16 }
   0xf   :  { %v1490_v42 = vld [vmem:[%s2248_s1 + $0x29c] sm:$0xf0]  ;;  %v1306_v46 = vld [vmem:[%s2248_s1 + $0x2a0] sm:$0xf0]  ;;  %v1376_v30 = vld [vmem:[%s2248_s1 + $0x308] sm:$0xf]  ;;  %v1185_v37 = vor.u32 %v1459_v28, %v1184_v27 }
  0x10   :  { %v1080_v47 = vld [vmem:[%s2248_s1 + $0xc0] sm:$0xf]  ;;  %v1430_v49 = vld [vmem:[%s2248_s1 + $0xc4] sm:$0xf]  ;;  %v1305_v51 = vor.u32 %v1490_v42, %v1304_v41  ;;  %v1309_v52 = vor.u32 %v1486_v45, %v1306_v46  ;;  %v1507_v31 = vld [vmem:[%s2248_s1 + $0x324] sm:$0xf0] }
  0x11   :  { %v1434_v48 = vld [vmem:[%s2248_s1 + $0xdc] sm:$0xf0]  ;;  %v1082_v50 = vld [vmem:[%s2248_s1 + $0xe0] sm:$0xf0]  ;;  %713 = vmatpush.bf16.msra.mxu1 %v1337_v39  ;;  %739 = vmatpush.bf16.msra.mxu3 %v1341_v40  ;;  %v1463_v33 = vld [vmem:[%s2248_s1 + $0x1cc] sm:$0xf]  ;;  %v1377_v38 = vor.u32 %v1507_v31, %v1376_v30 }
  0x12   :  { %v1272_v53 = vld [vmem:[%s2248_s1 + $0x240] sm:$0xf]  ;;  %v1478_v55 = vld [vmem:[%s2248_s1 + $0x244] sm:$0xf]  ;;  %699 = vmatpush.bf16.msra.mxu0 %v1113_v43  ;;  %725 = vmatpush.bf16.msra.mxu2 %v1117_v44  ;;  %v1081_v56 = vor.u32 %v1434_v48, %v1080_v47  ;;  %v1085_v57 = vor.u32 %v1430_v49, %v1082_v50  ;;  %v1218_v34 = vld [vmem:[%s2248_s1 + $0x1e8] sm:$0xf0] }
  0x13   :  { %v1482_v54 = vld [vmem:[%s2248_s1 + $0x25c] sm:$0xf0]  ;;  %v1274_v58 = vld [vmem:[%s2248_s1 + $0x260] sm:$0xf0]  ;;  %v1152_v39 = vld [vmem:[%s2248_s1 + $0x148] sm:$0xf]  ;;  %v1221_v42 = vor.u32 %v1463_v33, %v1218_v34 }
  0x14   :  { %v1048_v59 = vld [vmem:[%s2248_s1 + $0x80] sm:$0xf]  ;;  %v1422_v61 = vld [vmem:[%s2248_s1 + $0x84] sm:$0xf]  ;;  %v1273_v1 = vor.u32 %v1482_v54, %v1272_v53  ;;  %v1277_v2 = vor.u32 %v1478_v55, %v1274_v58  ;;  %v1451_v40 = vld [vmem:[%s2248_s1 + $0x164] sm:$0xf0] }
  0x15   :  { %v1426_v60 = vld [vmem:[%s2248_s1 + $0x9c] sm:$0xf0]  ;;  %v1050_v62 = vld [vmem:[%s2248_s1 + $0xa0] sm:$0xf0]  ;;  %714 = vmatpush.bf16.msra.mxu1 %v1305_v51  ;;  %740 = vmatpush.bf16.msra.mxu3 %v1309_v52  ;;  %v1344_v41 = vld [vmem:[%s2248_s1 + $0x2c8] sm:$0xf]  ;;  %v1153_v51 = vor.u32 %v1451_v40, %v1152_v39 }
  0x16   :  { %v1240_v3 = vld [vmem:[%s2248_s1 + $0x200] sm:$0xf]  ;;  %700 = vmatpush.bf16.msra.mxu0 %v1081_v56  ;;  %726 = vmatpush.bf16.msra.mxu2 %v1085_v57  ;;  %v1049_v5 = vor.u32 %v1426_v60, %v1048_v59  ;;  %v1053_v6 = vor.u32 %v1422_v61, %v1050_v62  ;;  %v1470_v7 = vld [vmem:[%s2248_s1 + $0x204] sm:$0xf]  ;;  %v682_v43 = vsel %vm671_vm0, %v559_v32, 0 }
  0x17   :  { %v1474_v4 = vld [vmem:[%s2248_s1 + $0x21c] sm:$0xf0]  ;;  %v1242_v8 = vld [vmem:[%s2248_s1 + $0x220] sm:$0xf0]  ;;  %v1499_v44 = vld [vmem:[%s2248_s1 + $0x2e4] sm:$0xf0] }
  0x18   :  { %v1016_v9 = vld [vmem:[%s2248_s1 + $0x40] sm:$0xf]  ;;  %v1414_v11 = vld [vmem:[%s2248_s1 + $0x44] sm:$0xf]  ;;  %v1241_v17 = vor.u32 %v1474_v4, %v1240_v3  ;;  %v1245_v18 = vor.u32 %v1470_v7, %v1242_v8  ;;  %v1455_v45 = vld [vmem:[%s2248_s1 + $0x18c] sm:$0xf]  ;;  %v1345_v52 = vor.u32 %v1499_v44, %v1344_v41 }
  0x19   :  { %v1418_v10 = vld [vmem:[%s2248_s1 + $0x5c] sm:$0xf0]  ;;  %v1018_v12 = vld [vmem:[%s2248_s1 + $0x60] sm:$0xf0]  ;;  %715 = vmatpush.bf16.msra.mxu1 %v1273_v1  ;;  %741 = vmatpush.bf16.msra.mxu3 %v1277_v2  ;;  %v1186_v46 = vld [vmem:[%s2248_s1 + $0x1a8] sm:$0xf0] }
  0x1a   :  { %v984_v19 = vld [vmem:[%s2248_s1] sm:$0xf]  ;;  %701 = vmatpush.bf16.msra.mxu0 %v1049_v5  ;;  %727 = vmatpush.bf16.msra.mxu2 %v1053_v6  ;;  %v1017_v21 = vor.u32 %v1418_v10, %v1016_v9  ;;  %v1021_v22 = vor.u32 %v1414_v11, %v1018_v12  ;;  %v1406_v23 = vld [vmem:[%s2248_s1 + $0x4] sm:$0xf]  ;;  %v1503_v47 = vld [vmem:[%s2248_s1 + $0x30c] sm:$0xf]  ;;  %v1189_v55 = vor.u32 %v1455_v45, %v1186_v46 }
  0x1b   :  { %v1410_v20 = vld [vmem:[%s2248_s1 + $0x1c] sm:$0xf0]  ;;  %v986_v24 = vld [vmem:[%s2248_s1 + $0x20] sm:$0xf0]  ;;  %v1378_v48 = vld [vmem:[%s2248_s1 + $0x328] sm:$0xf0] }
  0x1c   :  { %v14_v25 = vld [vmem:[%s2249_s0] sm:$0xf]  ;;  %v985_v35 = vor.u32 %v1410_v20, %v984_v19  ;;  %v989_v36 = vor.u32 %v1406_v23, %v986_v24  ;;  %v1120_v53 = vld [vmem:[%s2248_s1 + $0x108] sm:$0xf]  ;;  %v1381_v56 = vor.u32 %v1503_v47, %v1378_v48  ;;  %v1447_v59 = vld [vmem:[%s2248_s1 + $0x14c] sm:$0xf] }
  0x1d   :  { %124 = vst [vmem:[#allocation1] ss:$4 sm:$0xff] %v14_v25  ;;  %716 = vmatpush.bf16.msra.mxu1 %v1241_v17  ;;  %742 = vmatpush.bf16.msra.mxu3 %v1245_v18  ;;  %v1443_v54 = vld [vmem:[%s2248_s1 + $0x124] sm:$0xf0]  ;;  %v1154_v60 = vld [vmem:[%s2248_s1 + $0x168] sm:$0xf0] }
  0x1e   :  { %702 = vmatpush.bf16.msra.mxu0 %v1017_v21  ;;  %728 = vmatpush.bf16.msra.mxu2 %v1021_v22  ;;  %v1312_v57 = vld [vmem:[%s2248_s1 + $0x288] sm:$0xf]  ;;  %v1495_v61 = vld [vmem:[%s2248_s1 + $0x2cc] sm:$0xf]  ;;  %v1121_v63 = vor.u32 %v1443_v54, %v1120_v53  ;;  %v1157_v3 = vor.u32 %v1447_v59, %v1154_v60  ;;  %v1224_v23 = vld [vmem:[%s2248_s1 + $0x1d0] sm:$0xf] }
  0x1f   :  { %v1491_v58 = vld [vmem:[%s2248_s1 + $0x2a4] sm:$0xf0]  ;;  %v1346_v62 = vld [vmem:[%s2248_s1 + $0x2e8] sm:$0xf0]  ;;  %v1468_v24 = vld [vmem:[%s2248_s1 + $0x1ec] sm:$0xf0] }
  0x20   :  { %v1313_v0 = vor.u32 %v1491_v58, %v1312_v57  ;;  %v1088_v1 = vld [vmem:[%s2248_s1 + $0xc8] sm:$0xf]  ;;  %v1349_v4 = vor.u32 %v1495_v61, %v1346_v62  ;;  %v1439_v7 = vld [vmem:[%s2248_s1 + $0x10c] sm:$0xf]  ;;  %v1838_v25 = vld [vmem:[%s2248_s1 + $0x350] sm:$0xff]  ;;  %v1225_v34 = vor.u32 %v1468_v24, %v1224_v23 }
  0x21   :  { %748 = vmatpush.bf16.msrb.mxu1 %v1217_v26  ;;  %763 = vmatpush.bf16.msrb.mxu3 %v679_v29  ;;  %v1435_v2 = vld [vmem:[%s2248_s1 + $0xe4] sm:$0xf0]  ;;  %v1122_v8 = vld [vmem:[%s2248_s1 + $0x128] sm:$0xf0]  ;;  %v1460_v39 = vld [vmem:[%s2248_s1 + $0x1ac] sm:$0xf0]  ;;  %v449_v59 = vunpack.c.h.b16 %v1838_v25 }
  0x22   :  { %703 = vmatpush.bf16.msra.mxu0 %v985_v35  ;;  %729 = vmatpush.bf16.msra.mxu2 %v989_v36  ;;  %v1280_v5 = vld [vmem:[%s2248_s1 + $0x248] sm:$0xf]  ;;  %v1487_v9 = vld [vmem:[%s2248_s1 + $0x28c] sm:$0xf]  ;;  %v1089_v11 = vor.u32 %v1435_v2, %v1088_v1  ;;  %v1125_v15 = vor.u32 %v1439_v7, %v1122_v8  ;;  %v1464_v40 = vld [vmem:[%s2248_s1 + $0x1d4] sm:$0xf] }
  0x23   :  { %v1483_v6 = vld [vmem:[%s2248_s1 + $0x264] sm:$0xf0]  ;;  %v1314_v10 = vld [vmem:[%s2248_s1 + $0x2a8] sm:$0xf0]  ;;  %v1226_v41 = vld [vmem:[%s2248_s1 + $0x1f0] sm:$0xf0]  ;;  %v561_v8 = vpack.c.b16 %v449_v59, %v449_v59 }
  0x24   :  { %v1747_v49 = vld.sshfl [vmem:[#allocation1 + $0x8] sm:$0xff pattern:$0x73625140]  ;;  %v1749_v50 = vld.sshfl [vmem:[#allocation1] sm:$0xff pattern:$0x73625140]  ;;  %v1281_v12 = vor.u32 %v1483_v6, %v1280_v5  ;;  %v1317_v16 = vor.u32 %v1487_v9, %v1314_v10  ;;  %v1229_v48 = vor.u32 %v1464_v40, %v1226_v41 }
  0x25   :  { %749 = vmatpush.bf16.msrb.mxu1 %v1185_v37  ;;  %764 = vmatpush.bf16.msrb.mxu3 %v1377_v38  ;;  %v1427_v14 = vld [vmem:[%s2248_s1 + $0xa4] sm:$0xf0]  ;;  %v1431_v19 = vld [vmem:[%s2248_s1 + $0xcc] sm:$0xf]  ;;  %v1192_v37 = vld [vmem:[%s2248_s1 + $0x190] sm:$0xf]  ;;  %v448_v38 = vunpack.c.l.b16 %v1838_v25 }
  0x26   :  { %774 = vmatpush.bf16.msrb.mxu0 %v1221_v42  ;;  %789 = vmatpush.bf16.msrb.mxu2 %v682_v43  ;;  %v1248_v17 = vld [vmem:[%s2248_s1 + $0x208] sm:$0xf]  ;;  %v1090_v20 = vld [vmem:[%s2248_s1 + $0xe8] sm:$0xf0]  ;;  %v1057_v26 = vor.u32 %v1427_v14, %v1056_v13  ;;  %v1193_v47 = vor.u32 %v1460_v39, %v1192_v37  ;;  %v1160_v53 = vld [vmem:[%s2248_s1 + $0x150] sm:$0xf] }
  0x27   :  { %1399 = vmatmul.msk.bf16.vlgmr.msra.gmra.mxu3 %vm668_vm1, %v1747_v49  ;;  %730 = vmatmul.bf16.vlgmr.msra.gmra.mxu2 %v1749_v50  ;;  %v1475_v18 = vld [vmem:[%s2248_s1 + $0x224] sm:$0xf0]  ;;  %v1479_v21 = vld [vmem:[%s2248_s1 + $0x24c] sm:$0xf]  ;;  %v1093_v29 = vor.u32 %v1431_v19, %v1090_v20  ;;  %v560_v54 = vpack.c.b16 %v448_v38, %v448_v38  ;;  %v1194_v57 = vld [vmem:[%s2248_s1 + $0x1b0] sm:$0xf0] }
  0x28   :  { %1398 = vmatmul.msk.bf16.vlgmr.msra.gmra.mxu1 %vm668_vm1, %v1747_v49  ;;  %704 = vmatmul.bf16.vlgmr.msra.gmra.mxu0 %v1749_v50  ;;  %v1282_v22 = vld [vmem:[%s2248_s1 + $0x268] sm:$0xf0]  ;;  %v1249_v27 = vor.u32 %v1475_v18, %v1248_v17  ;;  %v1024_v28 = vld [vmem:[%s2248_s1 + $0x48] sm:$0xf]  ;;  %v1444_v5 = vld [vmem:[%s2248_s1 + $0x12c] sm:$0xf0] }
  0x29   :  { %750 = vmatpush.bf16.msrb.mxu1 %v1153_v51  ;;  %765 = vmatpush.bf16.msrb.mxu3 %v1345_v52  ;;  %v1285_v30 = vor.u32 %v1479_v21, %v1282_v22  ;;  %v1419_v31 = vld [vmem:[%s2248_s1 + $0x64] sm:$0xf0]  ;;  %v1423_v32 = vld [vmem:[%s2248_s1 + $0x8c] sm:$0xf]  ;;  %v685_v1 = vsel %vm671_vm0, %v560_v54, 0  ;;  %v688_v19 = vsel %vm671_vm0, %v561_v8, 0 }
  0x2a   :  { %775 = vmatpush.bf16.msrb.mxu0 %v1189_v55  ;;  %790 = vmatpush.bf16.msrb.mxu2 %v1381_v56  ;;  %v1058_v33 = vld [vmem:[%s2248_s1 + $0xa8] sm:$0xf0]  ;;  %v1025_v42 = vor.u32 %v1419_v31, %v1024_v28  ;;  %v992_v45 = vld [vmem:[%s2248_s1 + $0x8] sm:$0xf]  ;;  %v1452_v55 = vld [vmem:[%s2248_s1 + $0x16c] sm:$0xf0] }
  0x2b   :  { %v1471_v35 = vld [vmem:[%s2248_s1 + $0x20c] sm:$0xf]  ;;  %v1061_v43 = vor.u32 %v1423_v32, %v1058_v33  ;;  %v1411_v46 = vld [vmem:[%s2248_s1 + $0x24] sm:$0xf0]  ;;  %v1456_v56 = vld [vmem:[%s2248_s1 + $0x194] sm:$0xf] }
  0x2c   :  { %v1250_v36 = vld [vmem:[%s2248_s1 + $0x228] sm:$0xf0]  ;;  %v993_v58 = vor.u32 %v1411_v46, %v992_v45  ;;  %v1197_v2 = vor.u32 %v1456_v56, %v1194_v57  ;;  %v1448_v6 = vld [vmem:[%s2248_s1 + $0x154] sm:$0xf]  ;;  %v1096_v13 = vld [vmem:[%s2248_s1 + $0xd0] sm:$0xf] }
  0x2d   :  { %751 = vmatpush.bf16.msrb.mxu1 %v1121_v63  ;;  %766 = vmatpush.bf16.msrb.mxu3 %v1313_v0  ;;  %v1253_v44 = vor.u32 %v1471_v35, %v1250_v36  ;;  %v1415_v51 = vld [vmem:[%s2248_s1 + $0x4c] sm:$0xf]  ;;  %v1128_v63 = vld [vmem:[%s2248_s1 + $0x110] sm:$0xf]  ;;  %v1161_v0 = vor.u32 %v1452_v55, %v1160_v53  ;;  %v1162_v7 = vld [vmem:[%s2248_s1 + $0x170] sm:$0xf0] }
  0x2e   :  { %776 = vmatpush.bf16.msrb.mxu0 %v1157_v3  ;;  %791 = vmatpush.bf16.msrb.mxu2 %v1349_v4  ;;  %v1026_v52 = vld [vmem:[%s2248_s1 + $0x68] sm:$0xf0]  ;;  %v1384_v3 = vld [vmem:[%s2248_s1 + $0x310] sm:$0xf]  ;;  %v1440_v17 = vld [vmem:[%s2248_s1 + $0x114] sm:$0xf] }
  0x2f   :  { %v1029_v60 = vor.u32 %v1415_v51, %v1026_v52  ;;  %v1407_v61 = vld [vmem:[%s2248_s1 + $0xc] sm:$0xf]  ;;  %v1508_v4 = vld [vmem:[%s2248_s1 + $0x32c] sm:$0xf0]  ;;  %v1130_v18 = vld [vmem:[%s2248_s1 + $0x130] sm:$0xf0] }
  0x30   :  { %v994_v62 = vld [vmem:[%s2248_s1 + $0x28] sm:$0xf0]  ;;  %v1385_v10 = vor.u32 %v1508_v4, %v1384_v3  ;;  %v1352_v14 = vld [vmem:[%s2248_s1 + $0x2d0] sm:$0xf]  ;;  %v1504_v20 = vld [vmem:[%s2248_s1 + $0x314] sm:$0xf]  ;;  %v1133_v25 = vor.u32 %v1440_v17, %v1130_v18 }
  0x31   :  { %752 = vmatpush.bf16.msrb.mxu1 %v1089_v11  ;;  %767 = vmatpush.bf16.msrb.mxu3 %v1281_v12  ;;  %v997_v9 = vor.u32 %v1407_v61, %v994_v62  ;;  %v1129_v11 = vor.u32 %v1444_v5, %v1128_v63  ;;  %v1165_v12 = vor.u32 %v1448_v6, %v1162_v7  ;;  %v1386_v21 = vld [vmem:[%s2248_s1 + $0x330] sm:$0xf0]  ;;  %v1954_v23 = vld [vmem:[%s2248_s1 + $0x358] sm:$0xff]  ;;  %v1492_v28 = vld [vmem:[%s2248_s1 + $0x2ac] sm:$0xf0] }
  0x32   :  { %777 = vmatpush.bf16.msrb.mxu0 %v1125_v15  ;;  %792 = vmatpush.bf16.msrb.mxu2 %v1317_v16  ;;  %v1500_v15 = vld [vmem:[%s2248_s1 + $0x2ec] sm:$0xf0]  ;;  %v1432_v31 = vld [vmem:[%s2248_s1 + $0xd4] sm:$0xf]  ;;  %v450_v41 = vunpack.c.l.b16 %v1954_v23  ;;  %v1232_v63 = vld [vmem:[%s2248_s1 + $0x1d8] sm:$0xf]  ;;  %v451_v6 = vunpack.c.h.b16 %v1954_v23 }
  0x33   :  { %v1436_v16 = vld [vmem:[%s2248_s1 + $0xec] sm:$0xf0]  ;;  %v1353_v22 = vor.u32 %v1500_v15, %v1352_v14  ;;  %v1098_v32 = vld [vmem:[%s2248_s1 + $0xf0] sm:$0xf0]  ;;  %v1392_v14 = vld [vmem:[%s2248_s1 + $0x318] sm:$0xf] }
  0x34   :  { %v1097_v24 = vor.u32 %v1436_v16, %v1096_v13  ;;  %v1496_v33 = vld [vmem:[%s2248_s1 + $0x2d4] sm:$0xf]  ;;  %v1101_v37 = vor.u32 %v1432_v31, %v1098_v32  ;;  %v1032_v38 = vld [vmem:[%s2248_s1 + $0x50] sm:$0xf]  ;;  %v562_v57 = vpack.c.b16 %v450_v41, %v450_v41  ;;  %v1461_v13 = vld [vmem:[%s2248_s1 + $0x1b4] sm:$0xf0] }
  0x35   :  { %753 = vmatpush.bf16.msrb.mxu1 %v1057_v26  ;;  %768 = vmatpush.bf16.msrb.mxu3 %v1249_v27  ;;  %v1064_v26 = vld [vmem:[%s2248_s1 + $0x90] sm:$0xf]  ;;  %v1066_v45 = vld [vmem:[%s2248_s1 + $0xb0] sm:$0xf0]  ;;  %v1509_v15 = vld [vmem:[%s2248_s1 + $0x334] sm:$0xf0] }
  0x36   :  { %778 = vmatpush.bf16.msrb.mxu0 %v1093_v29  ;;  %793 = vmatpush.bf16.msrb.mxu2 %v1285_v30  ;;  %v1320_v27 = vld [vmem:[%s2248_s1 + $0x290] sm:$0xf]  ;;  %v1389_v29 = vor.u32 %v1504_v20, %v1386_v21  ;;  %v1488_v46 = vld [vmem:[%s2248_s1 + $0x294] sm:$0xf]  ;;  %v691_v4 = vsel %vm671_vm0, %v562_v57, 0 }
  0x37   :  { %v1428_v30 = vld [vmem:[%s2248_s1 + $0xac] sm:$0xf0]  ;;  %v1321_v35 = vor.u32 %v1492_v28, %v1320_v27  ;;  %v1416_v59 = vld [vmem:[%s2248_s1 + $0x54] sm:$0xf]  ;;  %v1465_v16 = vld [vmem:[%s2248_s1 + $0x1dc] sm:$0xf] }
  0x38   :  { %1400 = vmatmul.msk.bf16.vlgmr.msrb.gmra.mxu3 %vm668_vm1, %v1747_v49  ;;  %v1065_v36 = vor.u32 %v1428_v30, %v1064_v26  ;;  %v1288_v39 = vld [vmem:[%s2248_s1 + $0x250] sm:$0xf]  ;;  %v1480_v61 = vld [vmem:[%s2248_s1 + $0x254] sm:$0xf]  ;;  %v1234_v17 = vld [vmem:[%s2248_s1 + $0x1f8] sm:$0xf0] }
  0x39   :  { %800 = vmatpush.bf16.msra.mxu3 %v1225_v34  ;;  %754 = vmatpush.bf16.msrb.mxu1 %v1025_v42  ;;  %v1354_v34 = vld [vmem:[%s2248_s1 + $0x2f0] sm:$0xf0]  ;;  %v1484_v40 = vld [vmem:[%s2248_s1 + $0x26c] sm:$0xf0]  ;;  %v1237_v23 = vor.u32 %v1465_v16, %v1234_v17  ;;  %v1360_v26 = vld [vmem:[%s2248_s1 + $0x2d8] sm:$0xf] }
  0x3a   :  { %779 = vmatpush.bf16.msrb.mxu0 %v1061_v43  ;;  %794 = vmatpush.bf16.msrb.mxu2 %v1253_v44  ;;  %v1357_v42 = vor.u32 %v1496_v33, %v1354_v34  ;;  %v1420_v43 = vld [vmem:[%s2248_s1 + $0x6c] sm:$0xf0]  ;;  %v1424_v44 = vld [vmem:[%s2248_s1 + $0x94] sm:$0xf]  ;;  %v1501_v27 = vld [vmem:[%s2248_s1 + $0x2f4] sm:$0xf0] }
  0x3b   :  { %v1000_v51 = vld [vmem:[%s2248_s1 + $0x10] sm:$0xf]  ;;  %v1033_v52 = vor.u32 %v1420_v43, %v1032_v38  ;;  %v1069_v53 = vor.u32 %v1424_v44, %v1066_v45  ;;  %v1290_v62 = vld [vmem:[%s2248_s1 + $0x270] sm:$0xf0]  ;;  %v1457_v28 = vld [vmem:[%s2248_s1 + $0x19c] sm:$0xf]  ;;  %v1361_v34 = vor.u32 %v1501_v27, %v1360_v26 }
  0x3c   :  { %v1412_v54 = vld [vmem:[%s2248_s1 + $0x2c] sm:$0xf0]  ;;  %v1408_v5 = vld [vmem:[%s2248_s1 + $0x14] sm:$0xf]  ;;  %v1293_v7 = vor.u32 %v1480_v61, %v1290_v62  ;;  %v1505_v31 = vld [vmem:[%s2248_s1 + $0x31c] sm:$0xf] }
  0x3d   :  { %801 = vmatpush.bf16.msra.mxu3 %v1193_v47  ;;  %755 = vmatpush.bf16.msrb.mxu1 %v993_v58  ;;  %v1322_v47 = vld [vmem:[%s2248_s1 + $0x2b0] sm:$0xf0]  ;;  %v1256_v55 = vld [vmem:[%s2248_s1 + $0x210] sm:$0xf]  ;;  %v1394_v32 = vld [vmem:[%s2248_s1 + $0x338] sm:$0xf0] }
  0x3e   :  { %826 = vmatpush.bf16.msra.mxu2 %v1229_v48  ;;  %780 = vmatpush.bf16.msrb.mxu0 %v1029_v60  ;;  %v1289_v48 = vor.u32 %v1484_v40, %v1288_v39  ;;  %v1476_v56 = vld [vmem:[%s2248_s1 + $0x22c] sm:$0xf0]  ;;  %v1325_v58 = vor.u32 %v1488_v46, %v1322_v47  ;;  %v1034_v60 = vld [vmem:[%s2248_s1 + $0x70] sm:$0xf0]  ;;  %v1328_v38 = vld [vmem:[%s2248_s1 + $0x298] sm:$0xf]  ;;  %v1397_v39 = vor.u32 %v1505_v31, %v1394_v32 }
  0x3f   :  { %1401 = vmatmul.msk.bf16.vlgmr.msrb.gmra.mxu2 %vm668_vm1, %v1747_v49  ;;  %v1037_v3 = vor.u32 %v1416_v59, %v1034_v60  ;;  %v1493_v40 = vld [vmem:[%s2248_s1 + $0x2b4] sm:$0xf0]  ;;  %v1449_v41 = vld [vmem:[%s2248_s1 + $0x15c] sm:$0xf] }
  0x40   :  { %756 = vmatmul.bf16.vlgmr.msrb.gmra.mxu1 %v1749_v50  ;;  %v1497_v43 = vld [vmem:[%s2248_s1 + $0x2dc] sm:$0xf]  ;;  %v1329_v46 = vor.u32 %v1493_v40, %v1328_v38  ;;  %v1072_v62 = vld [vmem:[%s2248_s1 + $0x98] sm:$0xf] }
  0x41   :  { %815 = vmatpush.bf16.msra.mxu1 %v685_v1  ;;  %802 = vmatpush.bf16.msra.mxu3 %v1161_v0  ;;  %v1469_v0 = vld [vmem:[%s2248_s1 + $0x1f4] sm:$0xf0]  ;;  %v1257_v1 = vor.u32 %v1476_v56, %v1256_v55  ;;  %v1362_v44 = vld [vmem:[%s2248_s1 + $0x2f8] sm:$0xf0] }
  0x42   :  { %827 = vmatpush.bf16.msra.mxu2 %v1197_v2  ;;  %781 = vmatpush.bf16.msrb.mxu0 %v997_v9  ;;  %v1001_v2 = vor.u32 %v1412_v54, %v1000_v51  ;;  %v1233_v8 = vor.u32 %v1469_v0, %v1232_v63  ;;  %v1002_v9 = vld [vmem:[%s2248_s1 + $0x30] sm:$0xf0]  ;;  %v1437_v51 = vld [vmem:[%s2248_s1 + $0xf4] sm:$0xf0]  ;;  %v1441_v55 = vld [vmem:[%s2248_s1 + $0x11c] sm:$0xf] }
  0x43   :  { %v1005_v18 = vor.u32 %v1408_v5, %v1002_v9  ;;  %v1485_v54 = vld [vmem:[%s2248_s1 + $0x274] sm:$0xf0]  ;;  %v1138_v56 = vld [vmem:[%s2248_s1 + $0x138] sm:$0xf0] }
  0x44   :  { %v1489_v57 = vld [vmem:[%s2248_s1 + $0x29c] sm:$0xf]  ;;  %v1141_v61 = vor.u32 %v1441_v55, %v1138_v56  ;;  %v1429_v63 = vld [vmem:[%s2248_s1 + $0xb4] sm:$0xf0] }
  0x45   :  { %816 = vmatpush.bf16.msra.mxu1 %v1385_v10  ;;  %803 = vmatpush.bf16.msra.mxu3 %v1129_v11  ;;  %v1472_v10 = vld [vmem:[%s2248_s1 + $0x214] sm:$0xf]  ;;  %v1264_v0 = vld [vmem:[%s2248_s1 + $0x218] sm:$0xf]  ;;  %v1481_v5 = vld [vmem:[%s2248_s1 + $0x25c] sm:$0xf] }
  0x46   :  { %828 = vmatpush.bf16.msra.mxu2 %v1165_v12  ;;  %841 = vmatpush.bf16.msra.mxu0 %v688_v19  ;;  %v1258_v11 = vld [vmem:[%s2248_s1 + $0x230] sm:$0xf0]  ;;  %v1200_v12 = vld [vmem:[%s2248_s1 + $0x198] sm:$0xf]  ;;  %v563_v19 = vpack.c.b16 %v451_v6, %v451_v6  ;;  %v1298_v6 = vld [vmem:[%s2248_s1 + $0x278] sm:$0xf0] }
  0x47   :  { %782 = vmatmul.bf16.vlgmr.msrb.gmra.mxu0 %v1749_v50  ;;  %v1261_v20 = vor.u32 %v1472_v10, %v1258_v11  ;;  %v1201_v21 = vor.u32 %v1461_v13, %v1200_v12  ;;  %v1040_v10 = vld [vmem:[%s2248_s1 + $0x58] sm:$0xf]  ;;  %v1301_v12 = vor.u32 %v1481_v5, %v1298_v6  ;;  %v1425_v13 = vld [vmem:[%s2248_s1 + $0x9c] sm:$0xf] }
  0x48   :  { %v694_v30 = vsel %vm671_vm0, %v563_v19, 0  ;;  %v1421_v11 = vld [vmem:[%s2248_s1 + $0x74] sm:$0xf0]  ;;  %v1266_v16 = vld [vmem:[%s2248_s1 + $0x238] sm:$0xf0] }
  0x49   :  { %817 = vmatpush.bf16.msra.mxu1 %v1353_v22  ;;  %804 = vmatpush.bf16.msra.mxu3 %v1097_v24  ;;  %v1393_v22 = vor.u32 %v1509_v15, %v1392_v14  ;;  %v1168_v24 = vld [vmem:[%s2248_s1 + $0x158] sm:$0xf]  ;;  %v1074_v14 = vld [vmem:[%s2248_s1 + $0xb8] sm:$0xf0]  ;;  %v1041_v17 = vor.u32 %v1421_v11, %v1040_v10 }
  0x4a   :  { %829 = vmatpush.bf16.msra.mxu2 %v1133_v25  ;;  %842 = vmatpush.bf16.msra.mxu0 %v1389_v29  ;;  %v1453_v25 = vld [vmem:[%s2248_s1 + $0x174] sm:$0xf0]  ;;  %v1202_v29 = vld [vmem:[%s2248_s1 + $0x1b8] sm:$0xf0] }
  0x4b   :  { %v1169_v33 = vor.u32 %v1453_v25, %v1168_v24  ;;  %v1473_v15 = vld [vmem:[%s2248_s1 + $0x21c] sm:$0xf]  ;;  %v1008_v19 = vld [vmem:[%s2248_s1 + $0x18] sm:$0xf] }
  0x4c   :  { %v1409_v26 = vld [vmem:[%s2248_s1 + $0x1c] sm:$0xf] }
  0x4d   :  { %818 = vmatpush.bf16.msra.mxu1 %v1321_v35  ;;  %805 = vmatpush.bf16.msra.mxu3 %v1065_v36  ;;  %v1205_v35 = vor.u32 %v1457_v28, %v1202_v29  ;;  %v1136_v36 = vld [vmem:[%s2248_s1 + $0x118] sm:$0xf]  ;;  %v1010_v27 = vld [vmem:[%s2248_s1 + $0x38] sm:$0xf0] }
  0x4e   :  { %830 = vmatpush.bf16.msra.mxu2 %v1101_v37  ;;  %843 = vmatpush.bf16.msra.mxu0 %v1357_v42  ;;  %v1445_v37 = vld [vmem:[%s2248_s1 + $0x134] sm:$0xf0]  ;;  %v1170_v42 = vld [vmem:[%s2248_s1 + $0x178] sm:$0xf0]  ;;  %v1013_v28 = vor.u32 %v1409_v26, %v1010_v27 }
  0x4f   :  { %v1137_v45 = vor.u32 %v1445_v37, %v1136_v36  ;;  %v1173_v47 = vor.u32 %v1449_v41, %v1170_v42 }
  0x51   :  { %819 = vmatpush.bf16.msra.mxu1 %v1289_v48  ;;  %806 = vmatpush.bf16.msra.mxu3 %v1033_v52  ;;  %v1104_v48 = vld [vmem:[%s2248_s1 + $0xd8] sm:$0xf] }
  0x52   :  { %831 = vmatpush.bf16.msra.mxu2 %v1069_v53  ;;  %844 = vmatpush.bf16.msra.mxu0 %v1325_v58  ;;  %v1296_v52 = vld [vmem:[%s2248_s1 + $0x258] sm:$0xf]  ;;  %v1365_v53 = vor.u32 %v1497_v43, %v1362_v44  ;;  %v1330_v58 = vld [vmem:[%s2248_s1 + $0x2b8] sm:$0xf0]  ;;  %v1105_v59 = vor.u32 %v1437_v51, %v1104_v48 }
  0x53   :  { %v1297_v60 = vor.u32 %v1485_v54, %v1296_v52 }
  0x55   :  { %820 = vmatpush.bf16.msra.mxu1 %v1257_v1  ;;  %807 = vmatpush.bf16.msra.mxu3 %v1001_v2  ;;  %v1333_v1 = vor.u32 %v1489_v57, %v1330_v58  ;;  %v1477_v2 = vld [vmem:[%s2248_s1 + $0x234] sm:$0xf0] }
  0x56   :  { %832 = vmatpush.bf16.msra.mxu2 %v1037_v3  ;;  %845 = vmatpush.bf16.msra.mxu0 %v1293_v7  ;;  %v1433_v3 = vld [vmem:[%s2248_s1 + $0xdc] sm:$0xf]  ;;  %v1073_v7 = vor.u32 %v1429_v63, %v1072_v62 }
  0x58   :  { %1402 = vmatmul.msk.bf16.vlgmr.msra.gmra.mxu1 %vm668_vm1, %v1747_v49  ;;  %808 = vmatmul.bf16.vlgmr.msra.gmra.mxu3 %v1749_v50 }
  0x59   :  { %852 = vmatpush.bf16.msrb.mxu1 %v1233_v8  ;;  %867 = vmatpush.bf16.msrb.mxu3 %v691_v4  ;;  %v1106_v4 = vld [vmem:[%s2248_s1 + $0xf8] sm:$0xf0]  ;;  %v1265_v8 = vor.u32 %v1477_v2, %v1264_v0 }
  0x5a   :  { %833 = vmatpush.bf16.msra.mxu2 %v1005_v18  ;;  %846 = vmatpush.bf16.msra.mxu0 %v1261_v20  ;;  %v1109_v9 = vor.u32 %v1433_v3, %v1106_v4  ;;  %v1077_v18 = vor.u32 %v1425_v13, %v1074_v14  ;;  %v1413_v20 = vld [vmem:[%s2248_s1 + $0x34] sm:$0xf0] }
  0x5b   :  { %v1009_v24 = vor.u32 %v1413_v20, %v1008_v19 }
  0x5d   :  { %853 = vmatpush.bf16.msrb.mxu1 %v1201_v21  ;;  %868 = vmatpush.bf16.msrb.mxu3 %v1393_v22  ;;  %v1269_v21 = vor.u32 %v1473_v15, %v1266_v16  ;;  %v1417_v22 = vld [vmem:[%s2248_s1 + $0x5c] sm:$0xf] }
  0x5e   :  { %878 = vmatpush.bf16.msrb.mxu0 %v1237_v23  ;;  %893 = vmatpush.bf16.msrb.mxu2 %v694_v30  ;;  %v1042_v23 = vld [vmem:[%s2248_s1 + $0x78] sm:$0xf0] }
  0x5f   :  { %834 = vmatmul.bf16.vlgmr.msra.gmra.mxu2 %v1749_v50  ;;  %1403 = vmatmul.msk.bf16.vlgmr.msra.gmra.mxu0 %vm668_vm1, %v1747_v49  ;;  %v1045_v25 = vor.u32 %v1417_v22, %v1042_v23 }
  0x61   :  { %854 = vmatpush.bf16.msrb.mxu1 %v1169_v33  ;;  %869 = vmatpush.bf16.msrb.mxu3 %v1361_v34 }
  0x62   :  { %879 = vmatpush.bf16.msrb.mxu0 %v1205_v35  ;;  %894 = vmatpush.bf16.msrb.mxu2 %v1397_v39 }
  0x65   :  { %855 = vmatpush.bf16.msrb.mxu1 %v1137_v45  ;;  %870 = vmatpush.bf16.msrb.mxu3 %v1329_v46 }
  0x66   :  { %880 = vmatpush.bf16.msrb.mxu0 %v1173_v47  ;;  %895 = vmatpush.bf16.msrb.mxu2 %v1365_v53 }
  0x69   :  { %856 = vmatpush.bf16.msrb.mxu1 %v1105_v59  ;;  %871 = vmatpush.bf16.msrb.mxu3 %v1297_v60 }
  0x6a   :  { %881 = vmatpush.bf16.msrb.mxu0 %v1141_v61  ;;  %896 = vmatpush.bf16.msrb.mxu2 %v1333_v1 }
  0x6d   :  { %857 = vmatpush.bf16.msrb.mxu1 %v1073_v7  ;;  %872 = vmatpush.bf16.msrb.mxu3 %v1265_v8 }
  0x6e   :  { %882 = vmatpush.bf16.msrb.mxu0 %v1109_v9  ;;  %897 = vmatpush.bf16.msrb.mxu2 %v1301_v12 }
  0x70   :  { %1404 = vmatmul.msk.bf16.vlgmr.msrb.gmra.mxu3 %vm668_vm1, %v1747_v49 }
  0x71   :  { %858 = vmatpush.bf16.msrb.mxu1 %v1041_v17 }
  0x72   :  { %883 = vmatpush.bf16.msrb.mxu0 %v1077_v18  ;;  %898 = vmatpush.bf16.msrb.mxu2 %v1269_v21 }
  0x75   :  { %859 = vmatpush.bf16.msrb.mxu1 %v1009_v24  ;;  %1405 = vmatmul.msk.bf16.vlgmr.msrb.gmra.mxu2 %vm668_vm1, %v1747_v49 }
  0x76   :  { %884 = vmatpush.bf16.msrb.mxu0 %v1045_v25 }
  0x78   :  { %860 = vmatmul.bf16.vlgmr.msrb.gmra.mxu1 %v1749_v50 }
  0x7a   :  { %885 = vmatpush.bf16.msrb.mxu0 %v1013_v28 }
  0x7d   :  { %886 = vmatmul.bf16.vlgmr.msrb.gmra.mxu0 %v1749_v50 }
  0xa5   :  { %v718_v29 = vpop.f32.mrf.mxu1  ;;  %v705_v30 = vpop.f32.mrf.mxu0 }
  0xa6   :  { %v719_v31 = vadd.f32 %v718_v29, %v705_v30 }
  0xa8   :  { %v945_v32 = vmul.f32 %v719_v31, %v719_v31  ;;  %v928_v5 = vsel %vm671_vm0, %v719_v31, 0.0 }
  0xaa   :  { %v744_v33 = vpop.f32.mrf.mxu3  ;;  %v731_v34 = vpop.f32.mrf.mxu2  ;;  %v953_v36 = vsel %vm671_vm0, %v945_v32, 0.0 }
  0xab   :  { %v745_v35 = vadd.f32 %v744_v33, %v731_v34 }
  0xad   :  { %v912_v37 = vrot.slane %v745_v35, 4  ;;  %v946_v38 = vmul.f32 %v745_v35, %v745_v35  ;;  %v720_v39 = vpop.f32.mrf.mxu1  ;;  %v707_v49 = vpop.f32.mrf.mxu0  ;;  %v929_v6 = vsel %vm671_vm0, %v745_v35, 0.0 }
  0xae   :  { %v930_v8 = vadd.f32 %v929_v6, %v928_v5 }
  0xaf   :  { %v916_v40 = vsel %vm671_vm0, %v719_v31, %v912_v37  ;;  %v954_v41 = vsel %vm671_vm0, %v946_v38, 0.0 }
  0xb0   :  { %924 = vst [vmem:[%s2250_s2] sm:$0xff] %v916_v40  ;;  %v955_v50 = vadd.f32 %v954_v41, %v953_v36 }
  0xb2   :  { %v746_v42 = vpop.f32.mrf.mxu3  ;;  %v733_v43 = vpop.f32.mrf.mxu2 }
  0xbb   :  { %v770_v44 = vpop.f32.mrf.mxu3 }
  0xbd   :  { %v757_v45 = vpop.f32.mrf.mxu1 }
  0xbe   :  { %v771_v52 = vadd.f32 %v770_v44, %v757_v45 }
  0xc0   :  { %v931_v9 = vsel %vm671_vm0, %v771_v52, 0.0  ;;  %v947_v11 = vmul.f32 %v771_v52, %v771_v52 }
  0xc1   :  { %v932_v10 = vadd.f32 %v931_v9, %v930_v8 }
  0xc2   :  { %v796_v46 = vpop.f32.mrf.mxu2  ;;  %v956_v18 = vsel %vm671_vm0, %v947_v11, 0.0 }
  0xc3   :  { %v772_v51 = vpop.f32.mrf.mxu3  ;;  %v957_v25 = vadd.f32 %v956_v18, %v955_v50 }
  0xc4   :  { %v783_v47 = vpop.f32.mrf.mxu0 }
  0xc5   :  { %v797_v48 = vadd.f32 %v796_v46, %v783_v47  ;;  %v759_v54 = vpop.f32.mrf.mxu1 }
  0xc7   :  { %v913_v53 = vrot.slane %v797_v48, 4  ;;  %v933_v12 = vsel %vm671_vm0, %v797_v48, 0.0  ;;  %v948_v19 = vmul.f32 %v797_v48, %v797_v48 }
  0xc8   :  { %v934_v16 = vadd.f32 %v933_v12, %v932_v10 }
  0xc9   :  { %v917_v55 = vsel %vm671_vm0, %v771_v52, %v913_v53  ;;  %v958_v28 = vsel %vm671_vm0, %v948_v19, 0.0 }
  0xca   :  { %925 = vst [vmem:[%s2250_s2 + $0x8] sm:$0xff] %v917_v55  ;;  %v798_v56 = vpop.f32.mrf.mxu2  ;;  %v959_v38 = vadd.f32 %v958_v28, %v957_v25 }
  0xcc   :  { %v785_v57 = vpop.f32.mrf.mxu0 }
  0xd5   :  { %v822_v58 = vpop.f32.mrf.mxu1 }
  0xdb   :  { %v809_v60 = vpop.f32.mrf.mxu3 }
  0xdc   :  { %v848_v59 = vpop.f32.mrf.mxu0  ;;  %v823_v1 = vadd.f32 %v822_v58, %v809_v60 }
  0xdd   :  { %v824_v61 = vpop.f32.mrf.mxu1 }
  0xde   :  { %v935_v14 = vsel %vm671_vm0, %v823_v1, 0.0  ;;  %v949_v22 = vmul.f32 %v823_v1, %v823_v1 }
  0xdf   :  { %v936_v21 = vadd.f32 %v935_v14, %v934_v16 }
  0xe0   :  { %v960_v33 = vsel %vm671_vm0, %v949_v22, 0.0 }
  0xe1   :  { %v961_v50 = vadd.f32 %v960_v33, %v959_v38 }
  0xe2   :  { %v835_v62 = vpop.f32.mrf.mxu2 }
  0xe3   :  { %v849_v63 = vadd.f32 %v848_v59, %v835_v62  ;;  %v811_v3 = vpop.f32.mrf.mxu3 }
  0xe4   :  { %v850_v0 = vpop.f32.mrf.mxu0 }
  0xe5   :  { %v914_v2 = vrot.slane %v849_v63, 4  ;;  %v937_v20 = vsel %vm671_vm0, %v849_v63, 0.0  ;;  %v950_v29 = vmul.f32 %v849_v63, %v849_v63 }
  0xe6   :  { %v938_v27 = vadd.f32 %v937_v20, %v936_v21 }
  0xe7   :  { %v918_v4 = vsel %vm671_vm0, %v823_v1, %v914_v2  ;;  %v962_v41 = vsel %vm671_vm0, %v950_v29, 0.0 }
  0xe8   :  { %926 = vst [vmem:[%s2250_s2 + $0x10] sm:$0xff] %v918_v4  ;;  %v963_v45 = vadd.f32 %v962_v41, %v961_v50 }
  0xea   :  { %v837_v7 = vpop.f32.mrf.mxu2 }
  0xf3   :  { %v874_v13 = vpop.f32.mrf.mxu3 }
  0xf5   :  { %v861_v15 = vpop.f32.mrf.mxu1 }
  0xf6   :  { %v875_v17 = vadd.f32 %v874_v13, %v861_v15 }
  0xf8   :  { %v900_v23 = vpop.f32.mrf.mxu2  ;;  %v939_v24 = vsel %vm671_vm0, %v875_v17, 0.0  ;;  %v951_v34 = vmul.f32 %v875_v17, %v875_v17 }
  0xf9   :  { %v940_v32 = vadd.f32 %v939_v24, %v938_v27 }
  0xfa   :  { %v887_v26 = vpop.f32.mrf.mxu0  ;;  %v964_v43 = vsel %vm671_vm0, %v951_v34, 0.0 }
  0xfb   :  { %v901_v30 = vadd.f32 %v900_v23, %v887_v26  ;;  %v876_v31 = vpop.f32.mrf.mxu3  ;;  %v965_v47 = vadd.f32 %v964_v43, %v963_v45 }
  0xfd   :  { %v915_v35 = vrot.slane %v901_v30, 4  ;;  %v863_v36 = vpop.f32.mrf.mxu1  ;;  %v941_v37 = vsel %vm671_vm0, %v901_v30, 0.0  ;;  %v952_v40 = vmul.f32 %v901_v30, %v901_v30 }
  0xfe   :  { %v942_v39 = vadd.f32 %v941_v37, %v940_v32 }
  0xff   :  { %v919_v49 = vsel %vm671_vm0, %v875_v17, %v915_v35  ;;  %v966_v46 = vsel %vm671_vm0, %v952_v40, 0.0 }
 0x100   :  { %927 = vst [vmem:[%s2250_s2 + $0x18] sm:$0xff] %v919_v49  ;;  %943 = vadd.xlane.f32.xlu0 %v942_v39  ;;  %v902_v42 = vpop.f32.mrf.mxu2  ;;  %v967_v48 = vadd.f32 %v966_v46, %v965_v47 }
 0x102   :  { %v889_v44 = vpop.f32.mrf.mxu0 }
 0x108   :  { %968 = vadd.xlane.f32.xlu0 %v967_v48 }
 0x173   :  { %v944_v51 = vpop.xlane.xlu0 %943 }
 0x17b   :  { %v969_v52 = vpop.xlane.xlu0 %968 }
 0x17c   :  { %v971_v53 = vsel %vm970_vm2, %v944_v51, %v969_v52 }
 0x17d   :  { %973 = vst.msk [vmem:[%s2251_s3] sm:$0xf] %vm972_vm3, %v971_v53 }

// kernel: netG_forward.10
= control target key start
LH: loop header
LB: loop body
LE: loop exit
PB: predicated region body
PF: predicated region fallthrough
CT: control target
= control target key end

     0   :  { %v119_v0 = vmov 0   ;;  %v120_v3 = vmov 839922192   ;;  %vm91_vm0 = vcmask 1041408   ;;  %vm95_vm1 = vcmask 1045508   ;;  %s171_s1 = inlined_call_operand.vmem [shape: f32[4,1], index: 1, kind: input, shape index: {}]   ;;  %s172_s2 = inlined_call_operand.vmem [shape: f32[4,1], index: 2, kind: input, shape index: {}]   ;;  %s173_s0 = inlined_call_operand.vmem [shape: f32[4,1024], index: 0, kind: input, shape index: {}]   ;;  %s174_s3 = inlined_call_operand.vmem [shape: bf16[4,1024], index: 3, kind: output, shape index: {}]  }
   0x1   :  { %118 = vset.pattern.permute.xlu0 %v119_v0  ;;  %v18_v1 = vld [vmem:[%s171_s1] sm:$0xf]  ;;  %v24_v4 = vunpack.c.l.s4 %v120_v3  ;;  %v15_v9 = vld [vmem:[%s173_s0 + $0x8] sm:$0xff]  ;;  %v16_v10 = vld [vmem:[%s173_s0 + $0x10] sm:$0xff]  ;;  %vm99_vm2 = vcmask 1043456  }
   0x2   :  { %21 = vperm.xlu0 %118, %v18_v1   ;;  %v32_v2 = vld [vmem:[%s172_s2] sm:$0xf]  ;;  %v17_v11 = vld [vmem:[%s173_s0 + $0x18] sm:$0xff] }
   0x3   :  { %v25_v5 = vunpack.c.0.s8 %v24_v4  ;;  %v14_v8 = vld [vmem:[%s173_s0] sm:$0xff] }
   0xa   :  { %35 = vperm.xlu0 %118, %v32_v2  }
  0x74   :  { %v22_v6 = vpop.permute.xlu0 %21 }
  0x75   :  { %v26_v7 = vperm.slane %v22_v6, %v25_v5 }
  0x77   :  { %v28_v12 = vmul.f32 %v26_v7, %v14_v8  ;;  %v29_v14 = vmul.f32 %v26_v7, %v15_v9  ;;  %v30_v15 = vmul.f32 %v26_v7, %v16_v10  ;;  %v31_v16 = vmul.f32 %v26_v7, %v17_v11 }
  0x7c   :  { %v36_v13 = vpop.permute.xlu0 %35 }
  0x7d   :  { %v40_v17 = vperm.slane %v36_v13, %v25_v5 }
  0x7f   :  { %v42_v18 = vadd.f32 %v40_v17, %v28_v12  ;;  %v43_v19 = vadd.f32 %v40_v17, %v29_v14  ;;  %v44_v20 = vadd.f32 %v40_v17, %v30_v15  ;;  %v45_v21 = vadd.f32 %v40_v17, %v31_v16 }
  0x81   :  { %v46_v22 = vmax.f32 %v42_v18, 0.0  ;;  %v47_v23 = vmax.f32 %v43_v19, 0.0  ;;  %v48_v24 = vmax.f32 %v44_v20, 0.0  ;;  %v49_v25 = vmax.f32 %v45_v21, 0.0 }
  0x83   :  { %54 = vst [vmem:[#allocation1] ss:$2 sm:$0xff] %v46_v22 }
  0x84   :  { %56 = vst [vmem:[#allocation1 + $0x10] ss:$2 sm:$0xff] %v47_v23 }
  0x85   :  { %58 = vst [vmem:[#allocation1 + $0x20] ss:$2 sm:$0xff] %v48_v24 }
  0x86   :  { %60 = vst [vmem:[#allocation1 + $0x30] ss:$2 sm:$0xff] %v49_v25 }
  0x8a   :  { %v61_v26 = vld.sshfl [vmem:[#allocation1] sm:$0xff pattern:$0x75316420]  ;;  %v62_v27 = vld.sshfl [vmem:[#allocation1 + $0x8] sm:$0xff pattern:$0x75316420] }
  0x8b   :  { %v63_v28 = vld.sshfl [vmem:[#allocation1 + $0x10] sm:$0xff pattern:$0x75316420]  ;;  %v64_v29 = vld.sshfl [vmem:[#allocation1 + $0x18] sm:$0xff pattern:$0x75316420]  ;;  %v77_v30 = vpack.c.bf16 %v62_v27, %v61_v26 }
  0x8c   :  { %v65_v31 = vld.sshfl [vmem:[#allocation1 + $0x20] sm:$0xff pattern:$0x75316420]  ;;  %v66_v32 = vld.sshfl [vmem:[#allocation1 + $0x28] sm:$0xff pattern:$0x75316420]  ;;  %v78_v33 = vpack.c.bf16 %v64_v29, %v63_v28 }
  0x8d   :  { %v67_v34 = vld.sshfl [vmem:[#allocation1 + $0x30] sm:$0xff pattern:$0x75316420]  ;;  %v68_v35 = vld.sshfl [vmem:[#allocation1 + $0x38] sm:$0xff pattern:$0x75316420]  ;;  %v79_v36 = vpack.c.bf16 %v66_v32, %v65_v31 }
  0x8e   :  { %v80_v37 = vpack.c.bf16 %v68_v35, %v67_v34  ;;  %v85_v38 = vrot.slane %v77_v30, 2  ;;  %v86_v39 = vrot.slane %v78_v33, 4  ;;  %v87_v40 = vrot.slane %v78_v33, 6 }
  0x8f   :  { %v88_v41 = vrot.slane %v79_v36, 2 }
  0x90   :  { %v89_v42 = vrot.slane %v80_v37, 4  ;;  %v90_v43 = vrot.slane %v80_v37, 6  ;;  %v94_v44 = vsel %vm91_vm0, %v77_v30, %v85_v38  ;;  %v98_v45 = vsel %vm95_vm1, %v86_v39, %v87_v40 }
  0x91   :  { %v100_v46 = vsel %vm99_vm2, %v94_v44, %v98_v45  ;;  %v103_v47 = vsel %vm91_vm0, %v79_v36, %v88_v41 }
  0x92   :  { %v106_v48 = vsel %vm95_vm1, %v89_v42, %v90_v43  ;;  %110 = vst [vmem:[%s174_s3] sm:$0xff] %v100_v46 }
  0x93   :  { %v107_v49 = vsel %vm99_vm2, %v103_v47, %v106_v48 }
  0x94   :  { %111 = vst [vmem:[%s174_s3 + $0x8] sm:$0xff] %v107_v49 }

// kernel: netG_forward.11
= control target key start
LH: loop header
LB: loop body
LE: loop exit
PB: predicated region body
PF: predicated region fallthrough
CT: control target
= control target key end

     0   :  { %vm351_vm0 = vcmask 916480   ;;  %vm473_vm1 = vcmask 1041408   ;;  %vm475_vm2 = vcmask 1045508   ;;  %vm477_vm3 = vcmask 1043456   ;;  %s1236_s1 = inlined_call_operand.vmem [shape: bf16[112,1024], index: 1, kind: input, shape index: {}]   ;;  %s1237_s0 = inlined_call_operand.vmem [shape: bf16[2,112], index: 0, kind: input, shape index: {}]   ;;  %s1238_s2 = inlined_call_operand.vmem [shape: f32[2,1024], index: 2, kind: output, shape index: {0}]   ;;  %s1239_s3 = inlined_call_operand.vmem [shape: f32[1,2,2], index: 3, kind: output, shape index: {1}]  }
   0x1   :  { %v734_v0 = vld [vmem:[%s1236_s1 + $0x180] sm:$0xf]  ;;  %v820_v2 = vld [vmem:[%s1236_s1 + $0x184] sm:$0xf]  ;;  %v742_v5 = vld [vmem:[%s1236_s1 + $0x188] sm:$0xf] }
   0x2   :  { %v824_v1 = vld [vmem:[%s1236_s1 + $0x19c] sm:$0xf0]  ;;  %v736_v4 = vld [vmem:[%s1236_s1 + $0x1a0] sm:$0xf0]  ;;  %v825_v6 = vld [vmem:[%s1236_s1 + $0x1a4] sm:$0xf0] }
   0x3   :  { %v735_v3 = vor.u32 %v824_v1, %v734_v0  ;;  %v739_v7 = vor.u32 %v820_v2, %v736_v4  ;;  %v743_v8 = vor.u32 %v825_v6, %v742_v5  ;;  %v821_v9 = vld [vmem:[%s1236_s1 + $0x18c] sm:$0xf]  ;;  %v702_v11 = vld [vmem:[%s1236_s1 + $0x140] sm:$0xf]  ;;  %v812_v14 = vld [vmem:[%s1236_s1 + $0x144] sm:$0xf] }
   0x4   :  { %v744_v10 = vld [vmem:[%s1236_s1 + $0x1a8] sm:$0xf0]  ;;  %v816_v13 = vld [vmem:[%s1236_s1 + $0x15c] sm:$0xf0]  ;;  %v704_v15 = vld [vmem:[%s1236_s1 + $0x160] sm:$0xf0] }
   0x5   :  { %356 = vmatpush.bf16.msra.mxu0 %v735_v3  ;;  %v747_v12 = vor.u32 %v821_v9, %v744_v10  ;;  %369 = vmatpush.bf16.msra.mxu1 %v739_v7  ;;  %v703_v16 = vor.u32 %v816_v13, %v702_v11  ;;  %v707_v17 = vor.u32 %v812_v14, %v704_v15  ;;  %v710_v18 = vld [vmem:[%s1236_s1 + $0x148] sm:$0xf]  ;;  %v813_v20 = vld [vmem:[%s1236_s1 + $0x14c] sm:$0xf]  ;;  %v670_v23 = vld [vmem:[%s1236_s1 + $0x100] sm:$0xf] }
   0x6   :  { %382 = vmatpush.bf16.msra.mxu2 %v743_v8  ;;  %v817_v19 = vld [vmem:[%s1236_s1 + $0x164] sm:$0xf0]  ;;  %v712_v22 = vld [vmem:[%s1236_s1 + $0x168] sm:$0xf0]  ;;  %v808_v24 = vld [vmem:[%s1236_s1 + $0x11c] sm:$0xf0] }
   0x7   :  { %395 = vmatpush.bf16.msra.mxu3 %v747_v12  ;;  %v711_v21 = vor.u32 %v817_v19, %v710_v18  ;;  %v715_v25 = vor.u32 %v813_v20, %v712_v22  ;;  %v804_v26 = vld [vmem:[%s1236_s1 + $0x104] sm:$0xf]  ;;  %v678_v28 = vld [vmem:[%s1236_s1 + $0x108] sm:$0xf]  ;;  %v671_v29 = vor.u32 %v808_v24, %v670_v23  ;;  %v805_v31 = vld [vmem:[%s1236_s1 + $0x10c] sm:$0xf] }
   0x8   :  { %v672_v27 = vld [vmem:[%s1236_s1 + $0x120] sm:$0xf0]  ;;  %v809_v30 = vld [vmem:[%s1236_s1 + $0x124] sm:$0xf0]  ;;  %v680_v32 = vld [vmem:[%s1236_s1 + $0x128] sm:$0xf0] }
   0x9   :  { %357 = vmatpush.bf16.msra.mxu0 %v703_v16  ;;  %370 = vmatpush.bf16.msra.mxu1 %v707_v17  ;;  %v675_v33 = vor.u32 %v804_v26, %v672_v27  ;;  %v679_v34 = vor.u32 %v809_v30, %v678_v28  ;;  %v638_v35 = vld [vmem:[%s1236_s1 + $0xc0] sm:$0xf]  ;;  %v796_v37 = vld [vmem:[%s1236_s1 + $0xc4] sm:$0xf]  ;;  %v683_v38 = vor.u32 %v805_v31, %v680_v32  ;;  %v646_v40 = vld [vmem:[%s1236_s1 + $0xc8] sm:$0xf] }
   0xa   :  { %383 = vmatpush.bf16.msra.mxu2 %v711_v21  ;;  %v800_v36 = vld [vmem:[%s1236_s1 + $0xdc] sm:$0xf0]  ;;  %v640_v39 = vld [vmem:[%s1236_s1 + $0xe0] sm:$0xf0]  ;;  %v801_v41 = vld [vmem:[%s1236_s1 + $0xe4] sm:$0xf0] }
   0xb   :  { %396 = vmatpush.bf16.msra.mxu3 %v715_v25  ;;  %v797_v42 = vld [vmem:[%s1236_s1 + $0xcc] sm:$0xf]  ;;  %v639_v44 = vor.u32 %v800_v36, %v638_v35  ;;  %v643_v45 = vor.u32 %v796_v37, %v640_v39  ;;  %v647_v46 = vor.u32 %v801_v41, %v646_v40  ;;  %v606_v47 = vld [vmem:[%s1236_s1 + $0x80] sm:$0xf]  ;;  %v788_v49 = vld [vmem:[%s1236_s1 + $0x84] sm:$0xf] }
   0xc   :  { %v648_v43 = vld [vmem:[%s1236_s1 + $0xe8] sm:$0xf0]  ;;  %v792_v48 = vld [vmem:[%s1236_s1 + $0x9c] sm:$0xf0]  ;;  %v608_v51 = vld [vmem:[%s1236_s1 + $0xa0] sm:$0xf0] }
   0xd   :  { %358 = vmatpush.bf16.msra.mxu0 %v671_v29  ;;  %371 = vmatpush.bf16.msra.mxu1 %v675_v33  ;;  %v651_v50 = vor.u32 %v797_v42, %v648_v43  ;;  %v614_v52 = vld [vmem:[%s1236_s1 + $0x88] sm:$0xf]  ;;  %v789_v54 = vld [vmem:[%s1236_s1 + $0x8c] sm:$0xf]  ;;  %v607_v56 = vor.u32 %v792_v48, %v606_v47  ;;  %v611_v57 = vor.u32 %v788_v49, %v608_v51  ;;  %v574_v59 = vld [vmem:[%s1236_s1 + $0x40] sm:$0xf] }
   0xe   :  { %384 = vmatpush.bf16.msra.mxu2 %v679_v34  ;;  %v793_v53 = vld [vmem:[%s1236_s1 + $0xa4] sm:$0xf0]  ;;  %v616_v55 = vld [vmem:[%s1236_s1 + $0xa8] sm:$0xf0]  ;;  %v784_v60 = vld [vmem:[%s1236_s1 + $0x5c] sm:$0xf0] }
   0xf   :  { %397 = vmatpush.bf16.msra.mxu3 %v683_v38  ;;  %v615_v58 = vor.u32 %v793_v53, %v614_v52  ;;  %v780_v61 = vld [vmem:[%s1236_s1 + $0x44] sm:$0xf]  ;;  %v619_v62 = vor.u32 %v789_v54, %v616_v55  ;;  %v582_v0 = vld [vmem:[%s1236_s1 + $0x48] sm:$0xf]  ;;  %v781_v2 = vld [vmem:[%s1236_s1 + $0x4c] sm:$0xf]  ;;  %v575_v4 = vor.u32 %v784_v60, %v574_v59 }
  0x10   :  { %v576_v63 = vld [vmem:[%s1236_s1 + $0x60] sm:$0xf0]  ;;  %v785_v1 = vld [vmem:[%s1236_s1 + $0x64] sm:$0xf0]  ;;  %v584_v3 = vld [vmem:[%s1236_s1 + $0x68] sm:$0xf0] }
  0x11   :  { %359 = vmatpush.bf16.msra.mxu0 %v639_v44  ;;  %372 = vmatpush.bf16.msra.mxu1 %v643_v45  ;;  %v542_v5 = vld [vmem:[%s1236_s1] sm:$0xf]  ;;  %v579_v7 = vor.u32 %v780_v61, %v576_v63  ;;  %v583_v8 = vor.u32 %v785_v1, %v582_v0  ;;  %v772_v9 = vld [vmem:[%s1236_s1 + $0x4] sm:$0xf]  ;;  %v550_v11 = vld [vmem:[%s1236_s1 + $0x8] sm:$0xf]  ;;  %v587_v12 = vor.u32 %v781_v2, %v584_v3 }
  0x12   :  { %385 = vmatpush.bf16.msra.mxu2 %v647_v46  ;;  %v776_v6 = vld [vmem:[%s1236_s1 + $0x1c] sm:$0xf0]  ;;  %v544_v10 = vld [vmem:[%s1236_s1 + $0x20] sm:$0xf0]  ;;  %v777_v13 = vld [vmem:[%s1236_s1 + $0x24] sm:$0xf0] }
  0x13   :  { %398 = vmatpush.bf16.msra.mxu3 %v651_v50  ;;  %v773_v14 = vld [vmem:[%s1236_s1 + $0xc] sm:$0xf]  ;;  %v750_v16 = vld [vmem:[%s1236_s1 + $0x190] sm:$0xf]  ;;  %v822_v18 = vld [vmem:[%s1236_s1 + $0x194] sm:$0xf]  ;;  %v543_v19 = vor.u32 %v776_v6, %v542_v5  ;;  %v547_v23 = vor.u32 %v772_v9, %v544_v10  ;;  %v551_v24 = vor.u32 %v777_v13, %v550_v11 }
  0x14   :  { %v552_v15 = vld [vmem:[%s1236_s1 + $0x28] sm:$0xf0]  ;;  %v826_v17 = vld [vmem:[%s1236_s1 + $0x1ac] sm:$0xf0]  ;;  %v752_v20 = vld [vmem:[%s1236_s1 + $0x1b0] sm:$0xf0] }
  0x15   :  { %360 = vmatpush.bf16.msra.mxu0 %v607_v56  ;;  %373 = vmatpush.bf16.msra.mxu1 %v611_v57  ;;  %v758_v21 = vld [vmem:[%s1236_s1 + $0x198] sm:$0xf]  ;;  %v823_v25 = vld [vmem:[%s1236_s1 + $0x19c] sm:$0xf]  ;;  %v555_v27 = vor.u32 %v773_v14, %v552_v15  ;;  %v751_v28 = vor.u32 %v826_v17, %v750_v16  ;;  %v755_v29 = vor.u32 %v822_v18, %v752_v20  ;;  %v718_v31 = vld [vmem:[%s1236_s1 + $0x150] sm:$0xf] }
  0x16   :  { %386 = vmatpush.bf16.msra.mxu2 %v615_v58  ;;  %v827_v22 = vld [vmem:[%s1236_s1 + $0x1b4] sm:$0xf0]  ;;  %v760_v26 = vld [vmem:[%s1236_s1 + $0x1b8] sm:$0xf0]  ;;  %v818_v32 = vld [vmem:[%s1236_s1 + $0x16c] sm:$0xf0] }
  0x17   :  { %399 = vmatpush.bf16.msra.mxu3 %v619_v62  ;;  %v759_v30 = vor.u32 %v827_v22, %v758_v21  ;;  %v814_v33 = vld [vmem:[%s1236_s1 + $0x154] sm:$0xf]  ;;  %v763_v34 = vor.u32 %v823_v25, %v760_v26  ;;  %v726_v36 = vld [vmem:[%s1236_s1 + $0x158] sm:$0xf]  ;;  %v1061_v38 = vld [vmem:[%s1237_s0] sm:$0x1]  ;;  %v719_v41 = vor.u32 %v818_v32, %v718_v31 }
  0x18   :  { %v720_v35 = vld [vmem:[%s1236_s1 + $0x170] sm:$0xf0]  ;;  %v819_v37 = vld [vmem:[%s1236_s1 + $0x174] sm:$0xf0]  ;;  %v815_v39 = vld [vmem:[%s1236_s1 + $0x15c] sm:$0xf] }
  0x19   :  { %361 = vmatpush.bf16.msra.mxu0 %v575_v4  ;;  %374 = vmatpush.bf16.msra.mxu1 %v579_v7  ;;  %v728_v40 = vld [vmem:[%s1236_s1 + $0x178] sm:$0xf0]  ;;  %v723_v42 = vor.u32 %v814_v33, %v720_v35  ;;  %v727_v43 = vor.u32 %v819_v37, %v726_v36  ;;  %v686_v44 = vld [vmem:[%s1236_s1 + $0x110] sm:$0xf]  ;;  %v806_v46 = vld [vmem:[%s1236_s1 + $0x114] sm:$0xf] }
  0x1a   :  { %387 = vmatpush.bf16.msra.mxu2 %v583_v8  ;;  %v810_v45 = vld [vmem:[%s1236_s1 + $0x12c] sm:$0xf0]  ;;  %v731_v47 = vor.u32 %v815_v39, %v728_v40  ;;  %v688_v48 = vld [vmem:[%s1236_s1 + $0x130] sm:$0xf0]  ;;  %v694_v49 = vld [vmem:[%s1236_s1 + $0x118] sm:$0xf] }
  0x1b   :  { %400 = vmatpush.bf16.msra.mxu3 %v587_v12  ;;  %v811_v50 = vld [vmem:[%s1236_s1 + $0x134] sm:$0xf0]  ;;  %v807_v51 = vld [vmem:[%s1236_s1 + $0x11c] sm:$0xf]  ;;  %v687_v53 = vor.u32 %v810_v45, %v686_v44  ;;  %v691_v54 = vor.u32 %v806_v46, %v688_v48  ;;  %v654_v56 = vld [vmem:[%s1236_s1 + $0xd0] sm:$0xf] }
  0x1c   :  { %v696_v52 = vld [vmem:[%s1236_s1 + $0x138] sm:$0xf0]  ;;  %v695_v55 = vor.u32 %v811_v50, %v694_v49  ;;  %v802_v57 = vld [vmem:[%s1236_s1 + $0xec] sm:$0xf0]  ;;  %v798_v58 = vld [vmem:[%s1236_s1 + $0xd4] sm:$0xf] }
  0x1d   :  { %362 = vmatpush.bf16.msra.mxu0 %v543_v19  ;;  %375 = vmatpush.bf16.msra.mxu1 %v547_v23  ;;  %v699_v59 = vor.u32 %v807_v51, %v696_v52  ;;  %v656_v60 = vld [vmem:[%s1236_s1 + $0xf0] sm:$0xf0]  ;;  %v662_v61 = vld [vmem:[%s1236_s1 + $0xd8] sm:$0xf]  ;;  %v799_v63 = vld [vmem:[%s1236_s1 + $0xdc] sm:$0xf]  ;;  %v655_v1 = vor.u32 %v802_v57, %v654_v56 }
  0x1e   :  { %388 = vmatpush.bf16.msra.mxu2 %v551_v24  ;;  %v803_v62 = vld [vmem:[%s1236_s1 + $0xf4] sm:$0xf0]  ;;  %v664_v0 = vld [vmem:[%s1236_s1 + $0xf8] sm:$0xf0]  ;;  %v659_v2 = vor.u32 %v798_v58, %v656_v60  ;;  %v622_v4 = vld [vmem:[%s1236_s1 + $0x90] sm:$0xf] }
  0x1f   :  { %401 = vmatpush.bf16.msra.mxu3 %v555_v27  ;;  %v663_v3 = vor.u32 %v803_v62, %v662_v61  ;;  %v794_v5 = vld [vmem:[%s1236_s1 + $0xac] sm:$0xf0]  ;;  %v790_v6 = vld [vmem:[%s1236_s1 + $0x94] sm:$0xf]  ;;  %v667_v7 = vor.u32 %v799_v63, %v664_v0  ;;  %v630_v9 = vld [vmem:[%s1236_s1 + $0x98] sm:$0xf] }
  0x20   :  { %764 = vmatmul.msk.bf16.vlgmr.msra.gmra.mxu0 %vm351_vm0, %v1061_v38  ;;  %765 = vmatmul.msk.bf16.vlgmr.msra.gmra.mxu1 %vm351_vm0, %v1061_v38  ;;  %v624_v8 = vld [vmem:[%s1236_s1 + $0xb0] sm:$0xf0]  ;;  %v795_v10 = vld [vmem:[%s1236_s1 + $0xb4] sm:$0xf0]  ;;  %v791_v11 = vld [vmem:[%s1236_s1 + $0x9c] sm:$0xf]  ;;  %v623_v13 = vor.u32 %v794_v5, %v622_v4 }
  0x21   :  { %408 = vmatpush.bf16.msrb.mxu0 %v751_v28  ;;  %421 = vmatpush.bf16.msrb.mxu1 %v755_v29  ;;  %v632_v12 = vld [vmem:[%s1236_s1 + $0xb8] sm:$0xf0]  ;;  %v627_v14 = vor.u32 %v790_v6, %v624_v8  ;;  %v631_v15 = vor.u32 %v795_v10, %v630_v9  ;;  %v590_v16 = vld [vmem:[%s1236_s1 + $0x50] sm:$0xf]  ;;  %v782_v18 = vld [vmem:[%s1236_s1 + $0x54] sm:$0xf] }
  0x22   :  { %434 = vmatpush.bf16.msrb.mxu2 %v759_v30  ;;  %767 = vmatmul.msk.bf16.vlgmr.msra.gmra.mxu3 %vm351_vm0, %v1061_v38  ;;  %v786_v17 = vld [vmem:[%s1236_s1 + $0x6c] sm:$0xf0]  ;;  %v635_v19 = vor.u32 %v791_v11, %v632_v12  ;;  %v592_v20 = vld [vmem:[%s1236_s1 + $0x70] sm:$0xf0]  ;;  %v598_v21 = vld [vmem:[%s1236_s1 + $0x58] sm:$0xf] }
  0x23   :  { %447 = vmatpush.bf16.msrb.mxu3 %v763_v34  ;;  %766 = vmatmul.msk.bf16.vlgmr.msra.gmra.mxu2 %vm351_vm0, %v1061_v38  ;;  %v787_v22 = vld [vmem:[%s1236_s1 + $0x74] sm:$0xf0]  ;;  %v783_v23 = vld [vmem:[%s1236_s1 + $0x5c] sm:$0xf]  ;;  %v591_v25 = vor.u32 %v786_v17, %v590_v16  ;;  %v595_v26 = vor.u32 %v782_v18, %v592_v20  ;;  %v558_v28 = vld [vmem:[%s1236_s1 + $0x10] sm:$0xf] }
  0x24   :  { %v600_v24 = vld [vmem:[%s1236_s1 + $0x78] sm:$0xf0]  ;;  %v599_v27 = vor.u32 %v787_v22, %v598_v21  ;;  %v778_v29 = vld [vmem:[%s1236_s1 + $0x2c] sm:$0xf0]  ;;  %v774_v30 = vld [vmem:[%s1236_s1 + $0x14] sm:$0xf] }
  0x25   :  { %409 = vmatpush.bf16.msrb.mxu0 %v719_v41  ;;  %422 = vmatpush.bf16.msrb.mxu1 %v723_v42  ;;  %v603_v31 = vor.u32 %v783_v23, %v600_v24  ;;  %v560_v32 = vld [vmem:[%s1236_s1 + $0x30] sm:$0xf0]  ;;  %v566_v33 = vld [vmem:[%s1236_s1 + $0x18] sm:$0xf]  ;;  %v775_v35 = vld [vmem:[%s1236_s1 + $0x1c] sm:$0xf]  ;;  %v559_v37 = vor.u32 %v778_v29, %v558_v28 }
  0x26   :  { %435 = vmatpush.bf16.msrb.mxu2 %v727_v43  ;;  %v779_v34 = vld [vmem:[%s1236_s1 + $0x34] sm:$0xf0]  ;;  %v568_v36 = vld [vmem:[%s1236_s1 + $0x38] sm:$0xf0]  ;;  %v563_v39 = vor.u32 %v774_v30, %v560_v32  ;;  %vm528_vm4 = vcmask 7168   ;;  %vm530_vm5 = vcmask 9216  }
  0x27   :  { %448 = vmatpush.bf16.msrb.mxu3 %v731_v47  ;;  %v567_v40 = vor.u32 %v779_v34, %v566_v33  ;;  %v571_v41 = vor.u32 %v775_v35, %v568_v36 }
  0x29   :  { %410 = vmatpush.bf16.msrb.mxu0 %v687_v53  ;;  %423 = vmatpush.bf16.msrb.mxu1 %v691_v54 }
  0x2a   :  { %436 = vmatpush.bf16.msrb.mxu2 %v695_v55 }
  0x2b   :  { %449 = vmatpush.bf16.msrb.mxu3 %v699_v59 }
  0x2d   :  { %411 = vmatpush.bf16.msrb.mxu0 %v655_v1  ;;  %424 = vmatpush.bf16.msrb.mxu1 %v659_v2 }
  0x2e   :  { %437 = vmatpush.bf16.msrb.mxu2 %v663_v3 }
  0x2f   :  { %450 = vmatpush.bf16.msrb.mxu3 %v667_v7 }
  0x31   :  { %412 = vmatpush.bf16.msrb.mxu0 %v623_v13  ;;  %425 = vmatpush.bf16.msrb.mxu1 %v627_v14 }
  0x32   :  { %438 = vmatpush.bf16.msrb.mxu2 %v631_v15 }
  0x33   :  { %451 = vmatpush.bf16.msrb.mxu3 %v635_v19 }
  0x35   :  { %413 = vmatpush.bf16.msrb.mxu0 %v591_v25  ;;  %426 = vmatpush.bf16.msrb.mxu1 %v595_v26 }
  0x36   :  { %439 = vmatpush.bf16.msrb.mxu2 %v599_v27 }
  0x37   :  { %452 = vmatpush.bf16.msrb.mxu3 %v603_v31 }
  0x39   :  { %414 = vmatpush.bf16.msrb.mxu0 %v559_v37  ;;  %427 = vmatpush.bf16.msrb.mxu1 %v563_v39 }
  0x3a   :  { %440 = vmatpush.bf16.msrb.mxu2 %v567_v40 }
  0x3b   :  { %453 = vmatpush.bf16.msrb.mxu3 %v571_v41 }
  0x3c   :  { %768 = vmatmul.msk.bf16.vlgmr.msrb.gmra.mxu0 %vm351_vm0, %v1061_v38  ;;  %769 = vmatmul.msk.bf16.vlgmr.msrb.gmra.mxu1 %vm351_vm0, %v1061_v38 }
  0x3d   :  { %770 = vmatmul.msk.bf16.vlgmr.msrb.gmra.mxu2 %vm351_vm0, %v1061_v38 }
  0x3e   :  { %771 = vmatmul.msk.bf16.vlgmr.msrb.gmra.mxu3 %vm351_vm0, %v1061_v38 }
  0x9d   :  { %v364_v42 = vpop.f32.mrf.mxu0  ;;  %v377_v43 = vpop.f32.mrf.mxu1 }
  0x9e   :  { %v467_v44 = vrot.slane %v377_v43, 6  ;;  %v486_v54 = vsel %vm473_vm1, %v364_v42, 0.0  ;;  %v487_v55 = vsel %vm473_vm1, %v377_v43, 0.0  ;;  %v503_v57 = vmul.f32 %v364_v42, %v364_v42 }
  0x9f   :  { %v504_v58 = vmul.f32 %v377_v43, %v377_v43  ;;  %v488_v59 = vadd.f32 %v487_v55, %v486_v54 }
  0xa0   :  { %v474_v48 = vsel %vm473_vm1, %v364_v42, %v467_v44  ;;  %v511_v61 = vsel %vm473_vm1, %v503_v57, 0.0 }
  0xa1   :  { %v512_v62 = vsel %vm473_vm1, %v504_v58, 0.0 }
  0xa2   :  { %v513_v2 = vadd.f32 %v512_v62, %v511_v61 }
  0xa5   :  { %v403_v47 = vpop.f32.mrf.mxu3  ;;  %v366_v50 = vpop.f32.mrf.mxu0 }
  0xa6   :  { %v390_v45 = vpop.f32.mrf.mxu2  ;;  %v469_v49 = vrot.slane %v403_v47, 2  ;;  %v379_v52 = vpop.f32.mrf.mxu1  ;;  %v491_v1 = vsel %vm473_vm1, %v403_v47, 0.0  ;;  %v506_v4 = vmul.f32 %v403_v47, %v403_v47 }
  0xa7   :  { %v468_v46 = vrot.slane %v390_v45, 4  ;;  %v489_v60 = vsel %vm473_vm1, %v390_v45, 0.0  ;;  %v505_v63 = vmul.f32 %v390_v45, %v390_v45 }
  0xa8   :  { %v490_v0 = vadd.f32 %v489_v60, %v488_v59  ;;  %v516_v12 = vsel %vm473_vm1, %v506_v4, 0.0 }
  0xa9   :  { %v476_v51 = vsel %vm475_vm2, %v468_v46, %v469_v49  ;;  %v514_v3 = vsel %vm473_vm1, %v505_v63, 0.0 }
  0xaa   :  { %v478_v53 = vsel %vm477_vm3, %v474_v48, %v476_v51  ;;  %v492_v6 = vadd.f32 %v491_v1, %v490_v0  ;;  %v515_v10 = vadd.f32 %v514_v3, %v513_v2 }
  0xab   :  { %484 = vst [vmem:[%s1238_s2] sm:$0xff] %v478_v53 }
  0xac   :  { %v517_v16 = vadd.f32 %v516_v12, %v515_v10 }
  0xad   :  { %v405_v56 = vpop.f32.mrf.mxu3 }
  0xae   :  { %v392_v38 = vpop.f32.mrf.mxu2 }
  0xb9   :  { %v416_v5 = vpop.f32.mrf.mxu0  ;;  %v429_v8 = vpop.f32.mrf.mxu1 }
  0xba   :  { %v493_v7 = vsel %vm473_vm1, %v416_v5, 0.0  ;;  %v507_v9 = vmul.f32 %v416_v5, %v416_v5  ;;  %v495_v13 = vsel %vm473_vm1, %v429_v8, 0.0  ;;  %v508_v15 = vmul.f32 %v429_v8, %v429_v8 }
  0xbb   :  { %v494_v11 = vadd.f32 %v493_v7, %v492_v6  ;;  %v470_v17 = vrot.slane %v429_v8, 6 }
  0xbc   :  { %v518_v14 = vsel %vm473_vm1, %v507_v9, 0.0  ;;  %v520_v30 = vsel %vm473_vm1, %v508_v15, 0.0 }
  0xbd   :  { %v496_v19 = vadd.f32 %v495_v13, %v494_v11  ;;  %v519_v25 = vadd.f32 %v518_v14, %v517_v16  ;;  %v479_v31 = vsel %vm473_vm1, %v416_v5, %v470_v17 }
  0xbf   :  { %v521_v37 = vadd.f32 %v520_v30, %v519_v25 }
  0xc0   :  { %v442_v18 = vpop.f32.mrf.mxu2 }
  0xc1   :  { %v471_v20 = vrot.slane %v442_v18, 4  ;;  %v509_v21 = vmul.f32 %v442_v18, %v442_v18  ;;  %v455_v22 = vpop.f32.mrf.mxu3  ;;  %v418_v23 = vpop.f32.mrf.mxu0  ;;  %v497_v24 = vsel %vm473_vm1, %v442_v18, 0.0 }
  0xc2   :  { %v472_v26 = vrot.slane %v455_v22, 2  ;;  %v431_v27 = vpop.f32.mrf.mxu1  ;;  %v498_v28 = vadd.f32 %v497_v24, %v496_v19  ;;  %v499_v29 = vsel %vm473_vm1, %v455_v22, 0.0  ;;  %v510_v35 = vmul.f32 %v455_v22, %v455_v22 }
  0xc3   :  { %v522_v36 = vsel %vm473_vm1, %v509_v21, 0.0 }
  0xc4   :  { %v480_v32 = vsel %vm475_vm2, %v471_v20, %v472_v26  ;;  %v500_v33 = vadd.f32 %v499_v29, %v498_v28  ;;  %v523_v40 = vadd.f32 %v522_v36, %v521_v37  ;;  %v524_v42 = vsel %vm473_vm1, %v510_v35, 0.0 }
  0xc5   :  { %v481_v34 = vsel %vm477_vm3, %v479_v31, %v480_v32 }
  0xc6   :  { %485 = vst [vmem:[%s1238_s2 + $0x8] sm:$0xff] %v481_v34  ;;  %501 = vadd.xlane.f32.xlu0 %v500_v33  ;;  %v525_v43 = vadd.f32 %v524_v42, %v523_v40 }
  0xc8   :  { %v444_v39 = vpop.f32.mrf.mxu2 }
  0xc9   :  { %v457_v41 = vpop.f32.mrf.mxu3 }
  0xce   :  { %526 = vadd.xlane.f32.xlu0 %v525_v43 }
 0x139   :  { %v502_v44 = vpop.xlane.xlu0 %501 }
 0x141   :  { %v527_v45 = vpop.xlane.xlu0 %526 }
 0x142   :  { %v529_v46 = vsel %vm528_vm4, %v502_v44, %v527_v45 }
 0x143   :  { %531 = vst.msk [vmem:[%s1239_s3] sm:$0x3] %vm530_vm5, %v529_v46 }

// kernel: netG_forward.12
= control target key start
LH: loop header
LB: loop body
LE: loop exit
PB: predicated region body
PF: predicated region fallthrough
CT: control target
= control target key end

     0   :  { %v109_v0 = vmov 0   ;;  %v110_v3 = vmov 269488144   ;;  %vm78_vm0 = vcmask 1040384   ;;  %vm82_vm1 = vcmask 1042434   ;;  %s150_s1 = inlined_call_operand.vmem [shape: f32[2,1], index: 1, kind: input, shape index: {}]   ;;  %s151_s2 = inlined_call_operand.vmem [shape: f32[2,1], index: 2, kind: input, shape index: {}]   ;;  %s152_s0 = inlined_call_operand.vmem [shape: f32[2,1024], index: 0, kind: input, shape index: {}]   ;;  %s153_s3 = inlined_call_operand.vmem [shape: bf16[2,1024], index: 3, kind: output, shape index: {}]  }
   0x1   :  { %108 = vset.pattern.permute.xlu0 %v109_v0  ;;  %v16_v1 = vld [vmem:[%s150_s1] sm:$0x3]  ;;  %v22_v4 = vunpack.c.l.s4 %v110_v3  ;;  %v15_v9 = vld [vmem:[%s152_s0 + $0x8] sm:$0xff]  ;;  %vm86_vm2 = vcmask 1041408   ;;  %vm88_vm3 = vcmask 1044484   ;;  %vm92_vm4 = vcmask 1046534  }
   0x2   :  { %19 = vperm.xlu0 %108, %v16_v1   ;;  %v28_v2 = vld [vmem:[%s151_s2] sm:$0x3]  ;;  %vm96_vm5 = vcmask 1045508   ;;  %vm98_vm6 = vcmask 1043456  }
   0x3   :  { %v23_v6 = vunpack.c.0.s8 %v22_v4  ;;  %v14_v8 = vld [vmem:[%s152_s0] sm:$0xff] }
   0xa   :  { %31 = vperm.xlu0 %108, %v28_v2  }
  0x74   :  { %v20_v5 = vpop.permute.xlu0 %19 }
  0x75   :  { %v24_v7 = vperm.slane %v20_v5, %v23_v6 }
  0x77   :  { %v26_v11 = vmul.f32 %v24_v7, %v14_v8  ;;  %v27_v12 = vmul.f32 %v24_v7, %v15_v9 }
  0x7c   :  { %v32_v10 = vpop.permute.xlu0 %31 }
  0x7d   :  { %v36_v13 = vperm.slane %v32_v10, %v23_v6 }
  0x7f   :  { %v38_v14 = vadd.f32 %v36_v13, %v26_v11  ;;  %v39_v15 = vadd.f32 %v36_v13, %v27_v12 }
  0x81   :  { %v40_v16 = vmax.f32 %v38_v14, 0.0  ;;  %v41_v17 = vmax.f32 %v39_v15, 0.0 }
  0x83   :  { %44 = vst [vmem:[#allocation1] ss:$4 sm:$0xff] %v40_v16 }
  0x84   :  { %46 = vst [vmem:[#allocation1 + $0x20] ss:$4 sm:$0xff] %v41_v17 }
  0x8a   :  { %v47_v18 = vld.sshfl [vmem:[#allocation1] sm:$0xff pattern:$0x73625140]  ;;  %v48_v19 = vld.sshfl [vmem:[#allocation1 + $0x8] sm:$0xff pattern:$0x73625140] }
  0x8b   :  { %v49_v20 = vld.sshfl [vmem:[#allocation1 + $0x10] sm:$0xff pattern:$0x73625140]  ;;  %v50_v21 = vld.sshfl [vmem:[#allocation1 + $0x18] sm:$0xff pattern:$0x73625140]  ;;  %v63_v22 = vpack.c.bf16 %v48_v19, %v47_v18 }
  0x8c   :  { %v51_v23 = vld.sshfl [vmem:[#allocation1 + $0x20] sm:$0xff pattern:$0x73625140]  ;;  %v52_v24 = vld.sshfl [vmem:[#allocation1 + $0x28] sm:$0xff pattern:$0x73625140]  ;;  %v64_v25 = vpack.c.bf16 %v50_v21, %v49_v20 }
  0x8d   :  { %v53_v26 = vld.sshfl [vmem:[#allocation1 + $0x30] sm:$0xff pattern:$0x73625140]  ;;  %v54_v27 = vld.sshfl [vmem:[#allocation1 + $0x38] sm:$0xff pattern:$0x73625140]  ;;  %v65_v28 = vpack.c.bf16 %v52_v24, %v51_v23 }
  0x8e   :  { %v66_v29 = vpack.c.bf16 %v54_v27, %v53_v26  ;;  %v71_v30 = vrot.slane %v63_v22, 3  ;;  %v72_v31 = vrot.slane %v64_v25, 6  ;;  %v73_v32 = vrot.slane %v64_v25, 1 }
  0x8f   :  { %v74_v33 = vrot.slane %v65_v28, 4  ;;  %v75_v34 = vrot.slane %v65_v28, 7 }
  0x90   :  { %v76_v35 = vrot.slane %v66_v29, 2  ;;  %v77_v36 = vrot.slane %v66_v29, 5  ;;  %v81_v37 = vsel %vm78_vm0, %v63_v22, %v71_v30  ;;  %v85_v38 = vsel %vm82_vm1, %v72_v31, %v73_v32 }
  0x91   :  { %v87_v39 = vsel %vm86_vm2, %v81_v37, %v85_v38  ;;  %v91_v40 = vsel %vm88_vm3, %v74_v33, %v75_v34 }
  0x92   :  { %v95_v41 = vsel %vm92_vm4, %v76_v35, %v77_v36 }
  0x93   :  { %v97_v42 = vsel %vm96_vm5, %v91_v40, %v95_v41 }
  0x94   :  { %v99_v43 = vsel %vm98_vm6, %v87_v39, %v97_v42 }
  0x95   :  { %101 = vst [vmem:[%s153_s3] sm:$0xff] %v99_v43 }

// kernel: netG_forward.13
= control target key start
LH: loop header
LB: loop body
LE: loop exit
PB: predicated region body
PF: predicated region fallthrough
CT: control target
= control target key end

     0   :  { %vm185_vm0 = vcmask 1043456   ;;  %vm181_vm1 = vcmask 457728   ;;  %vm339_vm2 = vcmask 1042434   ;;  %vm343_vm3 = vcmask 1044484   ;;  %s694_s1 = inlined_call_operand.vmem [shape: bf16[56,1024], index: 1, kind: input, shape index: {}]   ;;  %s695_s0 = inlined_call_operand.vmem [shape: bf16[1,56], index: 0, kind: input, shape index: {}]   ;;  %s696_s2 = inlined_call_operand.vmem [shape: f32[1,1024], index: 2, kind: output, shape index: {}]  }
   0x1   :  { %v37_v0 = vld [vmem:[%s694_s1 + $0xc0] sm:$0xff]  ;;  %v38_v1 = vld [vmem:[%s694_s1 + $0xc8] sm:$0xff]  ;;  %v40_v34 = vld [vmem:[%s694_s1 + $0xd8] sm:$0xff]  ;;  %vm337_vm4 = vcmask 1040384   ;;  %vm341_vm5 = vcmask 1041408   ;;  %vm345_vm6 = vcmask 1046534  }
   0x2   :  { %v117_v2 = vunpack.c.l.b16 %v37_v0  ;;  %v118_v3 = vunpack.c.h.b16 %v37_v0  ;;  %v119_v4 = vunpack.c.l.b16 %v38_v1  ;;  %v120_v5 = vunpack.c.h.b16 %v38_v1  ;;  %v422_v6 = vld [vmem:[%s694_s1 + $0x80] sm:$0xf]  ;;  %v476_v12 = vld [vmem:[%s694_s1 + $0x84] sm:$0xf]  ;;  %v430_v14 = vld [vmem:[%s694_s1 + $0x88] sm:$0xf] }
   0x3   :  { %v480_v7 = vld [vmem:[%s694_s1 + $0x9c] sm:$0xf0]  ;;  %v424_v13 = vld [vmem:[%s694_s1 + $0xa0] sm:$0xf0]  ;;  %v481_v15 = vld [vmem:[%s694_s1 + $0xa4] sm:$0xf0]  ;;  %v123_v39 = vunpack.c.l.b16 %v40_v34  ;;  %v124_v40 = vunpack.c.h.b16 %v40_v34 }
   0x4   :  { %v149_v8 = vpack.c.b16 %v117_v2, %v117_v2  ;;  %v150_v9 = vpack.c.b16 %v118_v3, %v118_v3  ;;  %v151_v10 = vpack.c.b16 %v119_v4, %v119_v4  ;;  %v152_v11 = vpack.c.b16 %v120_v5, %v120_v5  ;;  %v477_v16 = vld [vmem:[%s694_s1 + $0x8c] sm:$0xf]  ;;  %v390_v24 = vld [vmem:[%s694_s1 + $0x40] sm:$0xf]  ;;  %v468_v28 = vld [vmem:[%s694_s1 + $0x44] sm:$0xf] }
   0x5   :  { %v432_v17 = vld [vmem:[%s694_s1 + $0xa8] sm:$0xf0]  ;;  %v423_v22 = vor.u32 %v480_v7, %v422_v6  ;;  %v427_v23 = vor.u32 %v476_v12, %v424_v13  ;;  %v472_v25 = vld [vmem:[%s694_s1 + $0x5c] sm:$0xf0]  ;;  %v431_v26 = vor.u32 %v481_v15, %v430_v14  ;;  %v392_v29 = vld [vmem:[%s694_s1 + $0x60] sm:$0xf0]  ;;  %v155_v52 = vpack.c.b16 %v123_v39, %v123_v39 }
   0x6   :  { %v187_v18 = vsel %vm185_vm0, %v149_v8, 0  ;;  %v190_v19 = vsel %vm185_vm0, %v150_v9, 0  ;;  %v193_v20 = vsel %vm185_vm0, %v151_v10, 0  ;;  %v196_v21 = vsel %vm185_vm0, %v152_v11, 0  ;;  %v398_v30 = vld [vmem:[%s694_s1 + $0x48] sm:$0xf] }
   0x7   :  { %214 = vmatpush.bf16.msra.mxu0 %v187_v18  ;;  %227 = vmatpush.bf16.msra.mxu1 %v190_v19  ;;  %v435_v27 = vor.u32 %v477_v16, %v432_v17  ;;  %v473_v31 = vld [vmem:[%s694_s1 + $0x64] sm:$0xf0]  ;;  %v469_v32 = vld [vmem:[%s694_s1 + $0x4c] sm:$0xf]  ;;  %v391_v35 = vor.u32 %v472_v25, %v390_v24  ;;  %v395_v36 = vor.u32 %v468_v28, %v392_v29  ;;  %v358_v37 = vld [vmem:[%s694_s1] sm:$0xf] }
   0x8   :  { %240 = vmatpush.bf16.msra.mxu2 %v193_v20  ;;  %253 = vmatpush.bf16.msra.mxu3 %v196_v21  ;;  %v400_v33 = vld [vmem:[%s694_s1 + $0x68] sm:$0xf0]  ;;  %v464_v38 = vld [vmem:[%s694_s1 + $0x1c] sm:$0xf0]  ;;  %v39_v41 = vld [vmem:[%s694_s1 + $0xd0] sm:$0xff]  ;;  %v399_v42 = vor.u32 %v473_v31, %v398_v30  ;;  %v156_v53 = vpack.c.b16 %v124_v40, %v124_v40  ;;  %v205_v62 = vsel %vm185_vm0, %v155_v52, 0 }
   0x9   :  { %v403_v43 = vor.u32 %v469_v32, %v400_v33  ;;  %v460_v44 = vld [vmem:[%s694_s1 + $0x4] sm:$0xf]  ;;  %v366_v46 = vld [vmem:[%s694_s1 + $0x8] sm:$0xf]  ;;  %v461_v48 = vld [vmem:[%s694_s1 + $0xc] sm:$0xf]  ;;  %v121_v50 = vunpack.c.l.b16 %v39_v41  ;;  %v122_v51 = vunpack.c.h.b16 %v39_v41  ;;  %v359_v54 = vor.u32 %v464_v38, %v358_v37 }
   0xa   :  { %v360_v45 = vld [vmem:[%s694_s1 + $0x20] sm:$0xf0]  ;;  %v465_v47 = vld [vmem:[%s694_s1 + $0x24] sm:$0xf0]  ;;  %v368_v49 = vld [vmem:[%s694_s1 + $0x28] sm:$0xf0] }
   0xb   :  { %215 = vmatpush.bf16.msra.mxu0 %v423_v22  ;;  %228 = vmatpush.bf16.msra.mxu1 %v427_v23  ;;  %v363_v55 = vor.u32 %v460_v44, %v360_v45  ;;  %v367_v56 = vor.u32 %v465_v47, %v366_v46  ;;  %v371_v57 = vor.u32 %v461_v48, %v368_v49  ;;  %v446_v60 = vld [vmem:[%s694_s1 + $0x98] sm:$0xf]  ;;  %v208_v63 = vsel %vm185_vm0, %v156_v53, 0  ;;  %v479_v0 = vld [vmem:[%s694_s1 + $0x9c] sm:$0xf] }
   0xc   :  { %241 = vmatpush.bf16.msra.mxu2 %v431_v26  ;;  %254 = vmatpush.bf16.msra.mxu3 %v435_v27  ;;  %v153_v58 = vpack.c.b16 %v121_v50, %v121_v50  ;;  %v154_v59 = vpack.c.b16 %v122_v51, %v122_v51  ;;  %v483_v61 = vld [vmem:[%s694_s1 + $0xb4] sm:$0xf0]  ;;  %v448_v1 = vld [vmem:[%s694_s1 + $0xb8] sm:$0xf0]  ;;  %v12_v2 = vld [vmem:[%s695_s0] sm:$0x1] }
   0xd   :  { %v438_v3 = vld [vmem:[%s694_s1 + $0x90] sm:$0xf]  ;;  %v478_v5 = vld [vmem:[%s694_s1 + $0x94] sm:$0xf]  ;;  %v447_v8 = vor.u32 %v483_v61, %v446_v60  ;;  %v451_v9 = vor.u32 %v479_v0, %v448_v1  ;;  %v414_v11 = vld [vmem:[%s694_s1 + $0x58] sm:$0xf] }
   0xe   :  { %v482_v4 = vld [vmem:[%s694_s1 + $0xac] sm:$0xf0]  ;;  %v199_v6 = vsel %vm185_vm0, %v153_v58, 0  ;;  %v202_v7 = vsel %vm185_vm0, %v154_v59, 0  ;;  %v440_v10 = vld [vmem:[%s694_s1 + $0xb0] sm:$0xf0] }
   0xf   :  { %216 = vmatpush.bf16.msra.mxu0 %v391_v35  ;;  %229 = vmatpush.bf16.msra.mxu1 %v395_v36  ;;  %v475_v12 = vld [vmem:[%s694_s1 + $0x74] sm:$0xf0]  ;;  %v471_v13 = vld [vmem:[%s694_s1 + $0x5c] sm:$0xf]  ;;  %v439_v15 = vor.u32 %v482_v4, %v438_v3  ;;  %v443_v16 = vor.u32 %v478_v5, %v440_v10  ;;  %v406_v17 = vld [vmem:[%s694_s1 + $0x50] sm:$0xf] }
  0x10   :  { %242 = vmatpush.bf16.msra.mxu2 %v399_v42  ;;  %255 = vmatpush.bf16.msra.mxu3 %v403_v43  ;;  %v416_v14 = vld [vmem:[%s694_s1 + $0x78] sm:$0xf0]  ;;  %v474_v18 = vld [vmem:[%s694_s1 + $0x6c] sm:$0xf0]  ;;  %v415_v19 = vor.u32 %v475_v12, %v414_v11  ;;  %v470_v21 = vld [vmem:[%s694_s1 + $0x54] sm:$0xf] }
  0x11   :  { %v419_v20 = vor.u32 %v471_v13, %v416_v14  ;;  %v408_v22 = vld [vmem:[%s694_s1 + $0x70] sm:$0xf0]  ;;  %v382_v23 = vld [vmem:[%s694_s1 + $0x18] sm:$0xf]  ;;  %v463_v25 = vld [vmem:[%s694_s1 + $0x1c] sm:$0xf]  ;;  %v407_v27 = vor.u32 %v474_v18, %v406_v17 }
  0x12   :  { %v467_v24 = vld [vmem:[%s694_s1 + $0x34] sm:$0xf0]  ;;  %v384_v26 = vld [vmem:[%s694_s1 + $0x38] sm:$0xf0]  ;;  %v411_v28 = vor.u32 %v470_v21, %v408_v22  ;;  %v374_v29 = vld [vmem:[%s694_s1 + $0x10] sm:$0xf] }
  0x13   :  { %217 = vmatpush.bf16.msra.mxu0 %v359_v54  ;;  %230 = vmatpush.bf16.msra.mxu1 %v363_v55  ;;  %v383_v30 = vor.u32 %v467_v24, %v382_v23  ;;  %v387_v31 = vor.u32 %v463_v25, %v384_v26  ;;  %v466_v32 = vld [vmem:[%s694_s1 + $0x2c] sm:$0xf0]  ;;  %v462_v33 = vld [vmem:[%s694_s1 + $0x14] sm:$0xf]  ;;  %vm347_vm7 = vcmask 1045508  }
  0x14   :  { %243 = vmatpush.bf16.msra.mxu2 %v367_v56  ;;  %256 = vmatpush.bf16.msra.mxu3 %v371_v57  ;;  %v376_v34 = vld [vmem:[%s694_s1 + $0x30] sm:$0xf0]  ;;  %v375_v35 = vor.u32 %v466_v32, %v374_v29 }
  0x15   :  { %v379_v36 = vor.u32 %v462_v33, %v376_v34 }
  0x16   :  { %452 = vmatmul.msk.bf16.vlgmr.msra.gmra.mxu0 %vm181_vm1, %v12_v2  ;;  %453 = vmatmul.msk.bf16.vlgmr.msra.gmra.mxu1 %vm181_vm1, %v12_v2 }
  0x17   :  { %454 = vmatmul.msk.bf16.vlgmr.msra.gmra.mxu2 %vm181_vm1, %v12_v2  ;;  %455 = vmatmul.msk.bf16.vlgmr.msra.gmra.mxu3 %vm181_vm1, %v12_v2 }
  0x18   :  { %292 = vmatpush.bf16.msrb.mxu2 %v205_v62  ;;  %305 = vmatpush.bf16.msrb.mxu3 %v208_v63 }
  0x19   :  { %266 = vmatpush.bf16.msrb.mxu0 %v199_v6  ;;  %279 = vmatpush.bf16.msrb.mxu1 %v202_v7 }
  0x1c   :  { %293 = vmatpush.bf16.msrb.mxu2 %v447_v8  ;;  %306 = vmatpush.bf16.msrb.mxu3 %v451_v9 }
  0x1d   :  { %267 = vmatpush.bf16.msrb.mxu0 %v439_v15  ;;  %280 = vmatpush.bf16.msrb.mxu1 %v443_v16 }
  0x20   :  { %294 = vmatpush.bf16.msrb.mxu2 %v415_v19  ;;  %307 = vmatpush.bf16.msrb.mxu3 %v419_v20 }
  0x21   :  { %268 = vmatpush.bf16.msrb.mxu0 %v407_v27  ;;  %281 = vmatpush.bf16.msrb.mxu1 %v411_v28 }
  0x24   :  { %295 = vmatpush.bf16.msrb.mxu2 %v383_v30  ;;  %308 = vmatpush.bf16.msrb.mxu3 %v387_v31 }
  0x25   :  { %269 = vmatpush.bf16.msrb.mxu0 %v375_v35  ;;  %282 = vmatpush.bf16.msrb.mxu1 %v379_v36 }
  0x27   :  { %458 = vmatmul.msk.bf16.vlgmr.msrb.gmra.mxu2 %vm181_vm1, %v12_v2  ;;  %459 = vmatmul.msk.bf16.vlgmr.msrb.gmra.mxu3 %vm181_vm1, %v12_v2 }
  0x28   :  { %456 = vmatmul.msk.bf16.vlgmr.msrb.gmra.mxu0 %vm181_vm1, %v12_v2  ;;  %457 = vmatmul.msk.bf16.vlgmr.msrb.gmra.mxu1 %vm181_vm1, %v12_v2 }
  0x93   :  { %v219_v37 = vpop.f32.mrf.mxu0  ;;  %v232_v38 = vpop.f32.mrf.mxu1 }
  0x9a   :  { %v245_v39 = vpop.f32.mrf.mxu2  ;;  %v258_v40 = vpop.f32.mrf.mxu3 }
  0x9b   :  { %v221_v41 = vpop.f32.mrf.mxu0  ;;  %v234_v42 = vpop.f32.mrf.mxu1  ;;  %484 = vtanh.f32 %v245_v39 }
  0x9c   :  { %486 = vtanh.f32 %v258_v40 }
  0xa1   :  { %v485_v47 = vpop.eup %484 }
  0xa2   :  { %v247_v43 = vpop.f32.mrf.mxu2  ;;  %v260_v44 = vpop.f32.mrf.mxu3  ;;  %v331_v56 = vrot.slane %v485_v47, 6 }
  0xa3   :  { %v487_v48 = vpop.eup %486 }
  0xa4   :  { %v332_v57 = vrot.slane %v487_v48, 5 }
  0xa5   :  { %v271_v45 = vpop.f32.mrf.mxu0  ;;  %v284_v46 = vpop.f32.mrf.mxu1 }
  0xa6   :  { %488 = vtanh.f32 %v271_v45  ;;  %v340_v3 = vsel %vm339_vm2, %v331_v56, %v332_v57 }
  0xa7   :  { %490 = vtanh.f32 %v284_v46 }
  0xa8   :  { %492 = vtanh.f32 %v232_v38 }
  0xa9   :  { %494 = vtanh.f32 %v219_v37 }
  0xaa   :  { %v297_v49 = vpop.f32.mrf.mxu2  ;;  %v310_v50 = vpop.f32.mrf.mxu3 }
  0xab   :  { %496 = vtanh.f32 %v297_v49 }
  0xac   :  { %v489_v51 = vpop.eup %488  ;;  %498 = vtanh.f32 %v310_v50 }
  0xad   :  { %v273_v52 = vpop.f32.mrf.mxu0  ;;  %v286_v53 = vpop.f32.mrf.mxu1  ;;  %v333_v58 = vrot.slane %v489_v51, 4 }
  0xae   :  { %v491_v54 = vpop.eup %490 }
  0xaf   :  { %v493_v55 = vpop.eup %492  ;;  %v334_v59 = vrot.slane %v491_v54, 3 }
  0xb0   :  { %v495_v60 = vpop.eup %494  ;;  %v330_v62 = vrot.slane %v493_v55, 7 }
  0xb1   :  { %v497_v61 = vpop.eup %496  ;;  %v344_v4 = vsel %vm343_vm3, %v333_v58, %v334_v59 }
  0xb2   :  { %v499_v63 = vpop.eup %498  ;;  %v335_v0 = vrot.slane %v497_v61, 2  ;;  %v299_v1 = vpop.f32.mrf.mxu2  ;;  %v338_v6 = vsel %vm337_vm4, %v495_v60, %v330_v62 }
  0xb3   :  { %v312_v2 = vpop.f32.mrf.mxu3  ;;  %v336_v5 = vrot.slane %v499_v63, 1  ;;  %v342_v8 = vsel %vm341_vm5, %v338_v6, %v340_v3 }
  0xb5   :  { %v346_v7 = vsel %vm345_vm6, %v335_v0, %v336_v5 }
  0xb6   :  { %v348_v9 = vsel %vm347_vm7, %v344_v4, %v346_v7 }
  0xb7   :  { %v349_v10 = vsel %vm185_vm0, %v342_v8, %v348_v9 }
  0xb8   :  { %351 = vst [vmem:[%s696_s2] sm:$0xff] %v349_v10 }

</bundles_post_ra>
